<compile_context>
chip_gen: v7x
topology: tpu7x:2x2x1
jax: 0.10.0
libtpu: 0.0.40
codegen_flags: <defaults>
</compile_context>

<pallas_src>
import functools
import math

import jax
import jax.numpy as jnp
from jax.experimental import pallas as pl
from jax.experimental.pallas import tpu as pltpu

MIN_DENOMINATOR = 1e-12
_VMEM_LIMIT = 48 * 1024 * 1024   # above the 16/32 MiB scoped defaults, below v7x's 64 MiB


def _round_up(x, m):
    return (x + m - 1) // m * m


def _div_floor(num_i32, den):
    """floor(num / den) for non-negative int32 vectors, den a python int.

    Float estimate + integer correction, so no vector integer divide is needed
    (portable across v5e/v6e/v7x lowering)."""
    q = jnp.floor(num_i32.astype(jnp.float32) * (1.0 / float(den))).astype(jnp.int32)
    q = jnp.where(q * den > num_i32, q - 1, q)
    q = jnp.where((q + 1) * den <= num_i32, q + 1, q)
    return q


# --------------------------------------------------------------------------
# VoxelGrid.coords_to_bounding_voxel_grid  — tiled scatter-mean kernel
# --------------------------------------------------------------------------
def _voxel_scatter_kernel(bounds_ref, nvalid_ref, coords_ref, feats_ref,
                          out_ref, acc_ref, *, voxel_size, tile_nc, tile_n,
                          nc_total):
    """Scatter-mean voxelization for one (batch, cell-tile, point-tile) block.

    bounds_ref : SMEM (B, 6)            [xmin, ymin, zmin, xmax, ymax, zmax]
    nvalid_ref : SMEM (1,)              number of real (un-padded) points
    coords_ref : VMEM (1, 3, TILE_N)
    feats_ref  : VMEM (1, Cf, TILE_N)
    out_ref    : VMEM (1, Cf+7, TILE_NC)  [mean xyz, mean feats, idx-grid, occ]
    acc_ref    : VMEM (4+Cf, TILE_NC)     running [sum xyz, sum feats, count]
    """
    V = voxel_size
    b = pl.program_id(0)
    c_tile = pl.program_id(1)
    t = pl.program_id(2)

    @pl.when(t == 0)
    def _init():
        acc_ref[...] = jnp.zeros_like(acc_ref)

    coords = coords_ref[0]                         # (3, TILE_N)
    feats = feats_ref[0]                           # (Cf, TILE_N)

    # validity: a real (non-padded) point ...
    pt_idx = jax.lax.broadcasted_iota(jnp.int32, (1, tile_n), 1) + t * tile_n
    valid = pt_idx < nvalid_ref[0]

    # ... landing in the interior of the torch padded grid (border cells are
    # cropped by torch, so those points are simply masked out here).
    flat = jnp.zeros((1, tile_n), jnp.int32)
    for ax, scale in enumerate((V * V, V, 1)):
        bb_min = bounds_ref[b, ax]
        bb_max = bounds_ref[b, 3 + ax]
        res = (bb_max - bb_min) / (float(V) + MIN_DENOMINATOR)
        inv_denom = 1.0 / (res + MIN_DENOMINATOR)  # hoisted scalar reciprocal
        shift = bb_min - res                       # bb_mins_shifted
        row = coords[ax:ax + 1, :]                 # (1, TILE_N)
        vi = jnp.floor((row - shift) * inv_denom).astype(jnp.int32)
        valid = valid & (vi >= 1) & (vi <= V)      # interior of padded grid
        flat = flat + jnp.clip(vi - 1, 0, V - 1) * scale

    flat = jnp.where(valid, flat, -1)              # -1 matches no cell

    # scatter-add over this cell tile, expressed as a one-hot MXU matmul.
    # (kept f32 x f32: preserves exact accumulation of coords/features)
    cell_ids = (jax.lax.broadcasted_iota(jnp.int32, (tile_nc, tile_n), 0)
                + c_tile * tile_nc)
    onehot = (cell_ids == flat).astype(jnp.float32)              # (TILE_NC, TILE_N)
    ones_row = jnp.ones((1, tile_n), jnp.float32)
    values = jnp.concatenate([coords, feats, ones_row], axis=0)  # (4+Cf, TILE_N)
    acc_ref[...] += jax.lax.dot_general(
        values, onehot, (((1,), (1,)), ((), ())),
        preferred_element_type=jnp.float32)                      # (4+Cf, TILE_NC)

    # finalize: mean, occupancy and normalized index grid for this cell tile
    @pl.when(t == pl.num_programs(2) - 1)
    def _finalize():
        summed = acc_ref[...]
        counts = summed[-1:, :]                                  # (1, TILE_NC)
        inv = pl.reciprocal(jnp.maximum(counts, 1.0), approx=False)
        mean = summed[:-1, :] * inv                              # (3+Cf, TILE_NC)
        occupied = (counts > 0.0).astype(jnp.float32)            # (1, TILE_NC)

        cid = (jax.lax.broadcasted_iota(jnp.int32, (1, tile_nc), 1)
               + c_tile * tile_nc)
        iz = _div_floor(cid, V * V)
        rem = cid - iz * (V * V)
        iy = _div_floor(rem, V)
        ix = rem - iy * V
        index_grid = jnp.concatenate(
            [iz.astype(jnp.float32), iy.astype(jnp.float32),
             ix.astype(jnp.float32)], axis=0) * (1.0 / float(V))  # (3, TILE_NC)

        out = jnp.concatenate([mean, index_grid, occupied], axis=0)
        in_range = cid < nc_total                                # lane padding
        out_ref[0] = jnp.where(in_range, out, 0.0)


def coords_to_bounding_voxel_grid(coords, coord_features, coord_bounds,
                                  voxel_size):
    """JAX/Pallas equivalent of VoxelGrid.coords_to_bounding_voxel_grid.

    Returns (voxel_grid, vox_flat):
      voxel_grid (B, 3+Cf+3+1, V, V, V)  channel-first (post torch permute)
      vox_flat   (B, 3+Cf+3+1, NC_pad)   same data, flat + lane-padded
    """
    B, N, _ = coords.shape
    Cf = coord_features.shape[-1]
    V = voxel_size
    NC = V * V * V
    C_out = Cf + 7          # coords(3) + feats(Cf) + index_grid(3) + occupancy(1)

    TILE_NC = min(512, _round_up(NC, 128))
    NC_pad = _round_up(NC, TILE_NC)
    TILE_N = min(1024, _round_up(N, 128))
    N_pad = _round_up(N, TILE_N)

    coords_cn = jnp.transpose(coords, (0, 2, 1)).astype(jnp.float32)     # (B,3,N)
    feats_cn = jnp.transpose(coord_features, (0, 2, 1)).astype(jnp.float32)
    if N_pad != N:
        pad = ((0, 0), (0, 0), (0, N_pad - N))
        coords_cn = jnp.pad(coords_cn, pad)
        feats_cn = jnp.pad(feats_cn, pad)
    bounds = jnp.broadcast_to(coord_bounds.astype(jnp.float32), (B, 6))
    n_valid = jnp.array([N], jnp.int32)

    kernel = functools.partial(_voxel_scatter_kernel, voxel_size=V,
                               tile_nc=TILE_NC, tile_n=TILE_N, nc_total=NC)
    vox_flat = pl.pallas_call(
        kernel,
        out_shape=jax.ShapeDtypeStruct((B, C_out, NC_pad), jnp.float32),
        grid=(B, NC_pad // TILE_NC, N_pad // TILE_N),
        in_specs=[
            pl.BlockSpec(memory_space=pltpu.MemorySpace.SMEM),            # bounds
            pl.BlockSpec(memory_space=pltpu.MemorySpace.SMEM),            # n_valid
            pl.BlockSpec((1, 3, TILE_N), lambda b, c, t: (b, 0, t)),      # coords
            pl.BlockSpec((1, Cf, TILE_N), lambda b, c, t: (b, 0, t)),     # feats
        ],
        out_specs=pl.BlockSpec((1, C_out, TILE_NC), lambda b, c, t: (b, 0, c)),
        scratch_shapes=[pltpu.VMEM((4 + Cf, TILE_NC), jnp.float32)],
        compiler_params=pltpu.CompilerParams(
            dimension_semantics=("parallel", "parallel", "arbitrary"),
            vmem_limit_bytes=_VMEM_LIMIT),
    )(bounds, n_valid, coords_cn, feats_cn)

    voxel_grid = vox_flat[:, :, :NC].reshape(B, C_out, V, V, V)
    return voxel_grid, vox_flat


# --------------------------------------------------------------------------
# Synthetic q-network stand-in (PerceiverIO architecture is not provided).
# --------------------------------------------------------------------------
# TODO(synk): the real `perceiver_encoder` (PerceiverIO) architecture is not
#   part of the given source; a deterministic linear q-head is used instead.
def _qtrans_kernel(w_ref, vox_ref, q_ref, pooled_ref, *, nv_total):
    """Streaming q_trans + channel mean-pool over one NV tile.

    w_ref      : SMEM (1, C)
    vox_ref    : VMEM (1, C, TILE_NV)
    q_ref      : VMEM (1, 1, TILE_NV)
    pooled_ref : VMEM (1, C, 1)   running channel sums -> mean at finalize
    """
    t = pl.program_id(1)

    @pl.when(t == 0)
    def _init():
        pooled_ref[...] = jnp.zeros_like(pooled_ref)

    vox = vox_ref[0]                                   # (C, TILE_NV)
    C = vox.shape[0]
    # M=1 "matvec": cheaper as C scalar*vector FMAs on the VPU than a 1-row MXU op.
    q = w_ref[0, 0] * vox[0:1, :]
    for c in range(1, C):
        q = q + w_ref[0, c] * vox[c:c + 1, :]
    q_ref[0] = q

    pooled_ref[0] = pooled_ref[0] + jnp.sum(vox, axis=1, keepdims=True)

    @pl.when(t == pl.num_programs(1) - 1)
    def _finalize():
        pooled_ref[...] = pooled_ref[...] * (1.0 / float(nv_total))


def qnet_forward(vox_flat, voxel_size, proprio, lang_goal_embs, bounds, params):
    B, C, NVp = vox_flat.shape
    V = voxel_size
    NV = V * V * V
    TILE_NV = math.gcd(NVp, 4096)      # lane-aligned divisor of the padded NV

    q_flat, pooled = pl.pallas_call(
        functools.partial(_qtrans_kernel, nv_total=NV),
        out_shape=(jax.ShapeDtypeStruct((B, 1, NVp), jnp.float32),
                   jax.ShapeDtypeStruct((B, C, 1), jnp.float32)),
        grid=(B, NVp // TILE_NV),
        in_specs=[pl.BlockSpec(memory_space=pltpu.MemorySpace.SMEM),      # w_trans
                  pl.BlockSpec((1, C, TILE_NV), lambda b, t: (b, 0, t))],
        out_specs=(pl.BlockSpec((1, 1, TILE_NV), lambda b, t: (b, 0, t)),
                   pl.BlockSpec((1, C, 1), lambda b, t: (b, 0, 0))),
        compiler_params=pltpu.CompilerParams(
            dimension_semantics=("parallel", "arbitrary"),
            vmem_limit_bytes=_VMEM_LIMIT),
    )(params["w_trans"], vox_flat)

    q_trans = q_flat[:, :, :NV].reshape(B, 1, V, V, V)
    pooled = pooled.reshape(B, C)
    lang_pooled = jnp.mean(lang_goal_embs, axis=1)
    h = jnp.concatenate([pooled, proprio, lang_pooled, bounds], axis=-1)

    # Tiny (~B x 52 x 27) head: plain XLA — a pallas_call would cost more in
    # launch/pipeline overhead than the matmul itself.
    head = h @ params["w_head"] + params["b_head"]
    rot_and_grip_q = head[:, :-1]          # (B, 3*num_rot_bins + 2)
    state_value = head[:, -1:]             # (B, 1)
    return q_trans, rot_and_grip_q, state_value


# --------------------------------------------------------------------------
# QFunction.forward
# --------------------------------------------------------------------------
def qfunction_forward(obs, proprio, pcd, lang_goal_embs, bounds, params,
                      voxel_size):
    bs = obs[0][0].shape[0]
    # NCHW -> (B, N, 3) / (B, N, Cf), same as the torch permute+reshape
    pcd_flat = jnp.concatenate(
        [jnp.transpose(p, (0, 2, 3, 1)).reshape(bs, -1, 3) for p in pcd],
        axis=1)
    image_features = [o[0] for o in obs]
    feat_size = image_features[0].shape[1]
    flat_imag_features = jnp.concatenate(
        [jnp.transpose(p, (0, 2, 3, 1)).reshape(bs, -1, feat_size)
         for p in image_features], axis=1)

    voxel_grid, vox_flat = coords_to_bounding_voxel_grid(
        pcd_flat, flat_imag_features, bounds, voxel_size)   # (B, C, V, V, V)

    if bounds.shape[0] != bs:
        bounds = jnp.tile(bounds, (bs, 1))

    q_trans, rot_and_grip_q, state_value = qnet_forward(
        vox_flat, voxel_size, proprio, lang_goal_embs, bounds, params)
    return q_trans, rot_and_grip_q, state_value, voxel_grid


# --------------------------------------------------------------------------
if __name__ == "__main__":
    key = jax.random.PRNGKey(0)
    bs, feat, H, Wimg = 2, 3, 16, 16
    voxel_size = 8
    proprio_dim, lang_tokens, lang_dim = 4, 8, 32
    rotation_resolution = 45.0
    num_rot = int(360 // rotation_resolution)

    k = jax.random.split(key, 8)
    pcd0 = jax.random.uniform(k[0], (bs, 3, H, Wimg), jnp.float32)    # NCHW pcd
    rgb0 = jax.random.normal(k[1], (bs, feat, H, Wimg), jnp.float32)  # NCHW feats
    obs = [[rgb0]]
    pcd = [pcd0]
    proprio = jax.random.normal(k[2], (bs, proprio_dim), jnp.float32)
    lang_goal_embs = jax.random.normal(
        k[3], (bs, lang_tokens, lang_dim), jnp.float32)
    bounds = jnp.tile(jnp.array([[0., 0., 0., 1., 1., 1.]], jnp.float32),
                      (bs, 1))

    C = feat + 7                        # coords(3)+feats+index_grid(3)+occ(1)
    head_in = C + proprio_dim + lang_dim + 6
    head_out = 3 * num_rot + 2 + 1      # rot_and_grip (+2 grip) + state value
    params = {
        "w_trans": 0.05 * jax.random.normal(k[4], (1, C), jnp.float32),
        "w_head": 0.05 * jax.random.normal(k[5], (head_in, head_out),
                                           jnp.float32),
        "b_head": jnp.zeros((1, head_out), jnp.float32),
    }

    q_trans, rot_grip_q, state_value, voxel_grid = qfunction_forward(
        obs, proprio, pcd, lang_goal_embs, bounds, params, voxel_size)
    jax.block_until_ready((q_trans, rot_grip_q, state_value, voxel_grid))

    assert q_trans.shape == (bs, 1, voxel_size, voxel_size, voxel_size)
    assert rot_grip_q.shape == (bs, 3 * num_rot + 2)
    assert state_value.shape == (bs, 1)
    assert voxel_grid.shape == (bs, C, voxel_size, voxel_size, voxel_size)
    print("KERNEL_OK")
</pallas_src>

<mosaic_0001>
module attributes {stable_mosaic.version = 11 : i64} {
  func.func @_voxel_scatter_kernel(%arg0: i32, %arg1: i32, %arg2: i32, %arg3: memref<2x6xf32, #tpu.memory_space<smem>>, %arg4: memref<1xi32, #tpu.memory_space<smem>>, %arg5: memref<1x3x256xf32, #tpu.memory_space<vmem>>, %arg6: memref<1x3x256xf32, #tpu.memory_space<vmem>>, %arg7: memref<1x10x512xf32, #tpu.memory_space<vmem>>, %arg8: memref<7x512xf32, #tpu.memory_space<vmem>>) attributes {dimension_semantics = [#tpu.dimension_semantics<parallel>, #tpu.dimension_semantics<parallel>, #tpu.dimension_semantics<arbitrary>], iteration_bounds = array<i64: 2, 1, 1>, scalar_prefetch = 0 : i64, scratch_operands = 1 : i64, tpu.core_type = #tpu.core_type<tc>, window_params = [{transform_indices = @transform_0, window_bounds = array<i64: 2, 6>}, {transform_indices = @transform_1, window_bounds = array<i64: 1>}, {transform_indices = @transform_2, window_bounds = array<i64: 1, 3, 256>}, {transform_indices = @transform_3, window_bounds = array<i64: 1, 3, 256>}, {transform_indices = @transform_4, window_bounds = array<i64: 1, 10, 512>}]} {
    %c0_i32 = arith.constant 0 : i32
    %0 = arith.cmpi eq, %arg2, %c0_i32 : i32
    %1 = arith.extui %0 : i1 to i32
    %c0_i32_0 = arith.constant 0 : i32
    %2 = arith.cmpi ne, %1, %c0_i32_0 : i32
    scf.if %2 {
      %cst_39 = arith.constant 0.000000e+00 : f32
      %127 = vector.broadcast %cst_39 : f32 to vector<7x512xf32>
      %c0_40 = arith.constant 0 : index
      %c0_41 = arith.constant 0 : index
      %128 = vector.load %arg8[%c0_40, %c0_41] : memref<7x512xf32, #tpu.memory_space<vmem>>, vector<7x512xf32>
      tpu.vector_store %arg8[%c0_40, %c0_41], %127 {strides = array<i32>} : memref<7x512xf32, #tpu.memory_space<vmem>>, vector<7x512xf32>,
    } else {
    }
    %c0 = arith.constant 0 : index
    %c0_1 = arith.constant 0 : index
    %c0_2 = arith.constant 0 : index
    %3 = vector.load %arg5[%c0, %c0_1, %c0_2] : memref<1x3x256xf32, #tpu.memory_space<vmem>>, vector<1x3x256xf32>
    %4 = vector.shape_cast %3 : vector<1x3x256xf32> to vector<3x256xf32>
    %c0_3 = arith.constant 0 : index
    %c0_4 = arith.constant 0 : index
    %c0_5 = arith.constant 0 : index
    %5 = vector.load %arg6[%c0_3, %c0_4, %c0_5] : memref<1x3x256xf32, #tpu.memory_space<vmem>>, vector<1x3x256xf32>
    %6 = vector.shape_cast %5 : vector<1x3x256xf32> to vector<3x256xf32>
    %7 = tpu.iota {dimensions = array<i32: 1>} : vector<1x256xi32>
    %c256_i32 = arith.constant 256 : i32
    %8 = arith.muli %arg2, %c256_i32 : i32
    %9 = vector.broadcast %8 : i32 to vector<1x256xi32>
    %10 = arith.addi %7, %9 : vector<1x256xi32>
    %c0_6 = arith.constant 0 : index
    %11 = memref.load %arg4[%c0_6] : memref<1xi32, #tpu.memory_space<smem>>
    %12 = vector.broadcast %11 : i32 to vector<1x256xi32>
    %13 = arith.cmpi slt, %10, %12 : vector<1x256xi32>
    %c0_i32_7 = arith.constant 0 : i32
    %14 = vector.broadcast %c0_i32_7 : i32 to vector<1x256xi32>
    %15 = arith.index_cast %arg0 : i32 to index
    %c0_8 = arith.constant 0 : index
    %16 = memref.load %arg3[%15, %c0_8] : memref<2x6xf32, #tpu.memory_space<smem>>
    %17 = arith.index_cast %arg0 : i32 to index
    %c3 = arith.constant 3 : index
    %18 = memref.load %arg3[%17, %c3] : memref<2x6xf32, #tpu.memory_space<smem>>
    %19 = arith.subf %18, %16 : f32
    %cst = arith.constant 8.000000e+00 : f32
    %20 = arith.divf %19, %cst : f32
    %cst_9 = arith.constant 9.99999996E-13 : f32
    %21 = arith.addf %20, %cst_9 : f32
    %cst_10 = arith.constant 1.000000e+00 : f32
    %22 = arith.divf %cst_10, %21 : f32
    %23 = arith.subf %16, %20 : f32
    %24 = vector.extract_strided_slice %4 {offsets = [0, 0], sizes = [1, 256], strides = [1, 1]} : vector<3x256xf32> to vector<1x256xf32>
    %25 = vector.broadcast %23 : f32 to vector<1x256xf32>
    %26 = arith.subf %24, %25 : vector<1x256xf32>
    %27 = vector.broadcast %22 : f32 to vector<1x256xf32>
    %28 = arith.mulf %26, %27 : vector<1x256xf32>
    %29 = math.floor %28 : vector<1x256xf32>
    %30 = arith.fptosi %29 : vector<1x256xf32> to vector<1x256xi32>
    %c1_i32 = arith.constant 1 : i32
    %31 = vector.broadcast %c1_i32 : i32 to vector<1x256xi32>
    %32 = arith.cmpi sge, %30, %31 : vector<1x256xi32>
    %33 = arith.andi %13, %32 : vector<1x256xi1>
    %c8_i32 = arith.constant 8 : i32
    %34 = vector.broadcast %c8_i32 : i32 to vector<1x256xi32>
    %35 = arith.cmpi sle, %30, %34 : vector<1x256xi32>
    %36 = arith.andi %33, %35 : vector<1x256xi1>
    %c1_i32_11 = arith.constant 1 : i32
    %37 = vector.broadcast %c1_i32_11 : i32 to vector<1x256xi32>
    %38 = arith.subi %30, %37 : vector<1x256xi32>
    %c0_i32_12 = arith.constant 0 : i32
    %c7_i32 = arith.constant 7 : i32
    %39 = vector.broadcast %c0_i32_12 : i32 to vector<1x256xi32>
    %40 = arith.maxsi %39, %38 : vector<1x256xi32>
    %41 = vector.broadcast %c7_i32 : i32 to vector<1x256xi32>
    %42 = arith.minsi %41, %40 : vector<1x256xi32>
    %c64_i32 = arith.constant 64 : i32
    %43 = vector.broadcast %c64_i32 : i32 to vector<1x256xi32>
    %44 = arith.muli %42, %43 : vector<1x256xi32>
    %45 = arith.addi %14, %44 : vector<1x256xi32>
    %46 = arith.index_cast %arg0 : i32 to index
    %c1 = arith.constant 1 : index
    %47 = memref.load %arg3[%46, %c1] : memref<2x6xf32, #tpu.memory_space<smem>>
    %48 = arith.index_cast %arg0 : i32 to index
    %c4 = arith.constant 4 : index
    %49 = memref.load %arg3[%48, %c4] : memref<2x6xf32, #tpu.memory_space<smem>>
    %50 = arith.subf %49, %47 : f32
    %cst_13 = arith.constant 8.000000e+00 : f32
    %51 = arith.divf %50, %cst_13 : f32
    %cst_14 = arith.constant 9.99999996E-13 : f32
    %52 = arith.addf %51, %cst_14 : f32
    %cst_15 = arith.constant 1.000000e+00 : f32
    %53 = arith.divf %cst_15, %52 : f32
    %54 = arith.subf %47, %51 : f32
    %55 = vector.extract_strided_slice %4 {offsets = [1, 0], sizes = [1, 256], strides = [1, 1]} : vector<3x256xf32> to vector<1x256xf32>
    %56 = vector.broadcast %54 : f32 to vector<1x256xf32>
    %57 = arith.subf %55, %56 : vector<1x256xf32>
    %58 = vector.broadcast %53 : f32 to vector<1x256xf32>
    %59 = arith.mulf %57, %58 : vector<1x256xf32>
    %60 = math.floor %59 : vector<1x256xf32>
    %61 = arith.fptosi %60 : vector<1x256xf32> to vector<1x256xi32>
    %c1_i32_16 = arith.constant 1 : i32
    %62 = vector.broadcast %c1_i32_16 : i32 to vector<1x256xi32>
    %63 = arith.cmpi sge, %61, %62 : vector<1x256xi32>
    %64 = arith.andi %36, %63 : vector<1x256xi1>
    %c8_i32_17 = arith.constant 8 : i32
    %65 = vector.broadcast %c8_i32_17 : i32 to vector<1x256xi32>
    %66 = arith.cmpi sle, %61, %65 : vector<1x256xi32>
    %67 = arith.andi %64, %66 : vector<1x256xi1>
    %c1_i32_18 = arith.constant 1 : i32
    %68 = vector.broadcast %c1_i32_18 : i32 to vector<1x256xi32>
    %69 = arith.subi %61, %68 : vector<1x256xi32>
    %c0_i32_19 = arith.constant 0 : i32
    %c7_i32_20 = arith.constant 7 : i32
    %70 = vector.broadcast %c0_i32_19 : i32 to vector<1x256xi32>
    %71 = arith.maxsi %70, %69 : vector<1x256xi32>
    %72 = vector.broadcast %c7_i32_20 : i32 to vector<1x256xi32>
    %73 = arith.minsi %72, %71 : vector<1x256xi32>
    %c8_i32_21 = arith.constant 8 : i32
    %74 = vector.broadcast %c8_i32_21 : i32 to vector<1x256xi32>
    %75 = arith.muli %73, %74 : vector<1x256xi32>
    %76 = arith.addi %45, %75 : vector<1x256xi32>
    %77 = arith.index_cast %arg0 : i32 to index
    %c2 = arith.constant 2 : index
    %78 = memref.load %arg3[%77, %c2] : memref<2x6xf32, #tpu.memory_space<smem>>
    %79 = arith.index_cast %arg0 : i32 to index
    %c5 = arith.constant 5 : index
    %80 = memref.load %arg3[%79, %c5] : memref<2x6xf32, #tpu.memory_space<smem>>
    %81 = arith.subf %80, %78 : f32
    %cst_22 = arith.constant 8.000000e+00 : f32
    %82 = arith.divf %81, %cst_22 : f32
    %cst_23 = arith.constant 9.99999996E-13 : f32
    %83 = arith.addf %82, %cst_23 : f32
    %cst_24 = arith.constant 1.000000e+00 : f32
    %84 = arith.divf %cst_24, %83 : f32
    %85 = arith.subf %78, %82 : f32
    %86 = vector.extract_strided_slice %4 {offsets = [2, 0], sizes = [1, 256], strides = [1, 1]} : vector<3x256xf32> to vector<1x256xf32>
    %87 = vector.broadcast %85 : f32 to vector<1x256xf32>
    %88 = arith.subf %86, %87 : vector<1x256xf32>
    %89 = vector.broadcast %84 : f32 to vector<1x256xf32>
    %90 = arith.mulf %88, %89 : vector<1x256xf32>
    %91 = math.floor %90 : vector<1x256xf32>
    %92 = arith.fptosi %91 : vector<1x256xf32> to vector<1x256xi32>
    %c1_i32_25 = arith.constant 1 : i32
    %93 = vector.broadcast %c1_i32_25 : i32 to vector<1x256xi32>
    %94 = arith.cmpi sge, %92, %93 : vector<1x256xi32>
    %95 = arith.andi %67, %94 : vector<1x256xi1>
    %c8_i32_26 = arith.constant 8 : i32
    %96 = vector.broadcast %c8_i32_26 : i32 to vector<1x256xi32>
    %97 = arith.cmpi sle, %92, %96 : vector<1x256xi32>
    %98 = arith.andi %95, %97 : vector<1x256xi1>
    %c1_i32_27 = arith.constant 1 : i32
    %99 = vector.broadcast %c1_i32_27 : i32 to vector<1x256xi32>
    %100 = arith.subi %92, %99 : vector<1x256xi32>
    %c0_i32_28 = arith.constant 0 : i32
    %c7_i32_29 = arith.constant 7 : i32
    %101 = vector.broadcast %c0_i32_28 : i32 to vector<1x256xi32>
    %102 = arith.maxsi %101, %100 : vector<1x256xi32>
    %103 = vector.broadcast %c7_i32_29 : i32 to vector<1x256xi32>
    %104 = arith.minsi %103, %102 : vector<1x256xi32>
    %c1_i32_30 = arith.constant 1 : i32
    %105 = vector.broadcast %c1_i32_30 : i32 to vector<1x256xi32>
    %106 = arith.muli %104, %105 : vector<1x256xi32>
    %107 = arith.addi %76, %106 : vector<1x256xi32>
    %c-1_i32 = arith.constant -1 : i32
    %108 = vector.broadcast %c-1_i32 : i32 to vector<1x256xi32>
    %109 = arith.select %98, %107, %108 : vector<1x256xi1>, vector<1x256xi32>
    %110 = tpu.iota {dimensions = array<i32: 0>} : vector<512x256xi32>
    %c512_i32 = arith.constant 512 : i32
    %111 = arith.muli %arg1, %c512_i32 : i32
    %112 = vector.broadcast %111 : i32 to vector<512x256xi32>
    %113 = arith.addi %110, %112 : vector<512x256xi32>
    %114 = vector.broadcast %109 : vector<1x256xi32> to vector<512x256xi32>
    %115 = arith.cmpi eq, %113, %114 : vector<512x256xi32>
    %116 = arith.extui %115 : vector<512x256xi1> to vector<512x256xi32>
    %117 = arith.sitofp %116 : vector<512x256xi32> to vector<512x256xf32>
    %cst_31 = arith.constant 1.000000e+00 : f32
    %118 = vector.broadcast %cst_31 : f32 to vector<1x256xf32>
    %119 = tpu.concatenate %4, %6, %118 in 0 : vector<3x256xf32>, vector<3x256xf32>, vector<1x256xf32> -> vector<7x256xf32>
    %c0_32 = arith.constant 0 : index
    %c0_33 = arith.constant 0 : index
    %120 = vector.load %arg8[%c0_32, %c0_33] : memref<7x512xf32, #tpu.memory_space<vmem>>, vector<7x512xf32>
    %cst_34 = arith.constant dense<0.000000e+00> : vector<7x512xf32>
    %121 = tpu.matmul %119, %117, %cst_34 {dimension_numbers = #tpu.dot_dimension_numbers<[1], [1], [0], [0], [0, 0, 1, 0], [], []>} : vector<7x256xf32>, vector<512x256xf32>, vector<7x512xf32> -> vector<7x512xf32>
    %122 = arith.addf %120, %121 : vector<7x512xf32>
    %c0_35 = arith.constant 0 : index
    %c0_36 = arith.constant 0 : index
    %123 = vector.load %arg8[%c0_35, %c0_36] : memref<7x512xf32, #tpu.memory_space<vmem>>, vector<7x512xf32>
    tpu.vector_store %arg8[%c0_35, %c0_36], %122 {strides = array<i32>} : memref<7x512xf32, #tpu.memory_space<vmem>>, vector<7x512xf32>,
    %c0_i32_37 = arith.constant 0 : i32
    %124 = arith.cmpi eq, %arg2, %c0_i32_37 : i32
    %125 = arith.extui %124 : i1 to i32
    %c0_i32_38 = arith.constant 0 : i32
    %126 = arith.cmpi ne, %125, %c0_i32_38 : i32
    scf.if %126 {
      %c0_39 = arith.constant 0 : index
      %c0_40 = arith.constant 0 : index
      %127 = vector.load %arg8[%c0_39, %c0_40] : memref<7x512xf32, #tpu.memory_space<vmem>>, vector<7x512xf32>
      %128 = vector.extract_strided_slice %127 {offsets = [6, 0], sizes = [1, 512], strides = [1, 1]} : vector<7x512xf32> to vector<1x512xf32>
      %cst_41 = arith.constant 1.000000e+00 : f32
      %129 = vector.broadcast %cst_41 : f32 to vector<1x512xf32>
      %130 = arith.maximumf %128, %129 : vector<1x512xf32>
      %131 = tpu.reciprocal %130 : vector<1x512xf32> -> vector<1x512xf32>
      %132 = vector.extract_strided_slice %127 {offsets = [0, 0], sizes = [6, 512], strides = [1, 1]} : vector<7x512xf32> to vector<6x512xf32>
      %133 = vector.broadcast %131 : vector<1x512xf32> to vector<6x512xf32>
      %134 = arith.mulf %132, %133 : vector<6x512xf32>
      %cst_42 = arith.constant 0.000000e+00 : f32
      %135 = vector.broadcast %cst_42 : f32 to vector<1x512xf32>
      %136 = arith.cmpf ogt, %128, %135 : vector<1x512xf32>
      %137 = arith.extui %136 : vector<1x512xi1> to vector<1x512xi32>
      %138 = arith.sitofp %137 : vector<1x512xi32> to vector<1x512xf32>
      %139 = tpu.iota {dimensions = array<i32: 1>} : vector<1x512xi32>
      %c512_i32_43 = arith.constant 512 : i32
      %140 = arith.muli %arg1, %c512_i32_43 : i32
      %141 = vector.broadcast %140 : i32 to vector<1x512xi32>
      %142 = arith.addi %139, %141 : vector<1x512xi32>
      %143 = arith.sitofp %142 : vector<1x512xi32> to vector<1x512xf32>
      %cst_44 = arith.constant 1.562500e-02 : f32
      %144 = vector.broadcast %cst_44 : f32 to vector<1x512xf32>
      %145 = arith.mulf %143, %144 : vector<1x512xf32>
      %146 = math.floor %145 : vector<1x512xf32>
      %147 = arith.fptosi %146 : vector<1x512xf32> to vector<1x512xi32>
      %c64_i32_45 = arith.constant 64 : i32
      %148 = vector.broadcast %c64_i32_45 : i32 to vector<1x512xi32>
      %149 = arith.muli %147, %148 : vector<1x512xi32>
      %150 = arith.cmpi sgt, %149, %142 : vector<1x512xi32>
      %c1_i32_46 = arith.constant 1 : i32
      %151 = vector.broadcast %c1_i32_46 : i32 to vector<1x512xi32>
      %152 = arith.subi %147, %151 : vector<1x512xi32>
      %153 = arith.select %150, %152, %147 : vector<1x512xi1>, vector<1x512xi32>
      %c1_i32_47 = arith.constant 1 : i32
      %154 = vector.broadcast %c1_i32_47 : i32 to vector<1x512xi32>
      %155 = arith.addi %153, %154 : vector<1x512xi32>
      %c64_i32_48 = arith.constant 64 : i32
      %156 = vector.broadcast %c64_i32_48 : i32 to vector<1x512xi32>
      %157 = arith.muli %155, %156 : vector<1x512xi32>
      %158 = arith.cmpi sle, %157, %142 : vector<1x512xi32>
      %c1_i32_49 = arith.constant 1 : i32
      %159 = vector.broadcast %c1_i32_49 : i32 to vector<1x512xi32>
      %160 = arith.addi %153, %159 : vector<1x512xi32>
      %161 = arith.select %158, %160, %153 : vector<1x512xi1>, vector<1x512xi32>
      %c64_i32_50 = arith.constant 64 : i32
      %162 = vector.broadcast %c64_i32_50 : i32 to vector<1x512xi32>
      %163 = arith.muli %161, %162 : vector<1x512xi32>
      %164 = arith.subi %142, %163 : vector<1x512xi32>
      %165 = arith.sitofp %164 : vector<1x512xi32> to vector<1x512xf32>
      %cst_51 = arith.constant 1.250000e-01 : f32
      %166 = vector.broadcast %cst_51 : f32 to vector<1x512xf32>
      %167 = arith.mulf %165, %166 : vector<1x512xf32>
      %168 = math.floor %167 : vector<1x512xf32>
      %169 = arith.fptosi %168 : vector<1x512xf32> to vector<1x512xi32>
      %c8_i32_52 = arith.constant 8 : i32
      %170 = vector.broadcast %c8_i32_52 : i32 to vector<1x512xi32>
      %171 = arith.muli %169, %170 : vector<1x512xi32>
      %172 = arith.cmpi sgt, %171, %164 : vector<1x512xi32>
      %c1_i32_53 = arith.constant 1 : i32
      %173 = vector.broadcast %c1_i32_53 : i32 to vector<1x512xi32>
      %174 = arith.subi %169, %173 : vector<1x512xi32>
      %175 = arith.select %172, %174, %169 : vector<1x512xi1>, vector<1x512xi32>
      %c1_i32_54 = arith.constant 1 : i32
      %176 = vector.broadcast %c1_i32_54 : i32 to vector<1x512xi32>
      %177 = arith.addi %175, %176 : vector<1x512xi32>
      %c8_i32_55 = arith.constant 8 : i32
      %178 = vector.broadcast %c8_i32_55 : i32 to vector<1x512xi32>
      %179 = arith.muli %177, %178 : vector<1x512xi32>
      %180 = arith.cmpi sle, %179, %164 : vector<1x512xi32>
      %c1_i32_56 = arith.constant 1 : i32
      %181 = vector.broadcast %c1_i32_56 : i32 to vector<1x512xi32>
      %182 = arith.addi %175, %181 : vector<1x512xi32>
      %183 = arith.select %180, %182, %175 : vector<1x512xi1>, vector<1x512xi32>
      %c8_i32_57 = arith.constant 8 : i32
      %184 = vector.broadcast %c8_i32_57 : i32 to vector<1x512xi32>
      %185 = arith.muli %183, %184 : vector<1x512xi32>
      %186 = arith.subi %164, %185 : vector<1x512xi32>
      %187 = arith.sitofp %161 : vector<1x512xi32> to vector<1x512xf32>
      %188 = arith.sitofp %183 : vector<1x512xi32> to vector<1x512xf32>
      %189 = arith.sitofp %186 : vector<1x512xi32> to vector<1x512xf32>
      %190 = tpu.concatenate %187, %188, %189 in 0 : vector<1x512xf32>, vector<1x512xf32>, vector<1x512xf32> -> vector<3x512xf32>
      %cst_58 = arith.constant 1.250000e-01 : f32
      %191 = vector.broadcast %cst_58 : f32 to vector<3x512xf32>
      %192 = arith.mulf %190, %191 : vector<3x512xf32>
      %193 = tpu.concatenate %134, %192, %138 in 0 : vector<6x512xf32>, vector<3x512xf32>, vector<1x512xf32> -> vector<10x512xf32>
      %c512_i32_59 = arith.constant 512 : i32
      %194 = vector.broadcast %c512_i32_59 : i32 to vector<1x512xi32>
      %195 = arith.cmpi slt, %142, %194 : vector<1x512xi32>
      %cst_60 = arith.constant 0.000000e+00 : f32
      %196 = vector.shape_cast %195 : vector<1x512xi1> to vector<1x512xi1>
      %197 = vector.broadcast %196 : vector<1x512xi1> to vector<10x512xi1>
      %198 = vector.broadcast %cst_60 : f32 to vector<10x512xf32>
      %199 = arith.select %197, %193, %198 : vector<10x512xi1>, vector<10x512xf32>
      %c0_61 = arith.constant 0 : index
      %c0_62 = arith.constant 0 : index
      %c0_63 = arith.constant 0 : index
      %200 = vector.load %arg7[%c0_61, %c0_62, %c0_63] : memref<1x10x512xf32, #tpu.memory_space<vmem>>, vector<1x10x512xf32>
      %201 = vector.shape_cast %200 : vector<1x10x512xf32> to vector<10x512xf32>
      %202 = vector.shape_cast %199 : vector<10x512xf32> to vector<1x10x512xf32>
      tpu.vector_store %arg7[%c0_61, %c0_62, %c0_63], %202 {strides = array<i32>} : memref<1x10x512xf32, #tpu.memory_space<vmem>>, vector<1x10x512xf32>,
    } else {
    }
    return
  }
  func.func @transform_0(%arg0: i32, %arg1: i32, %arg2: i32) -> (i32, i32) {
    %c0_i32 = arith.constant 0 : i32
    %c0_i32_0 = arith.constant 0 : i32
    %c0_i32_1 = arith.constant 0 : i32
    return %c0_i32, %c0_i32_0 : i32, i32
  }
  func.func @transform_1(%arg0: i32, %arg1: i32, %arg2: i32) -> i32 {
    %c0_i32 = arith.constant 0 : i32
    %c0_i32_0 = arith.constant 0 : i32
    return %c0_i32 : i32
  }
  func.func @transform_2(%arg0: i32, %arg1: i32, %arg2: i32) -> (i32, i32, i32) {
    %c0_i32 = arith.constant 0 : i32
    %c0_i32_0 = arith.constant 0 : i32
    return %arg0, %c0_i32, %arg2 : i32, i32, i32
  }
  func.func @transform_3(%arg0: i32, %arg1: i32, %arg2: i32) -> (i32, i32, i32) {
    %c0_i32 = arith.constant 0 : i32
    %c0_i32_0 = arith.constant 0 : i32
    return %arg0, %c0_i32, %arg2 : i32, i32, i32
  }
  func.func @transform_4(%arg0: i32, %arg1: i32, %arg2: i32) -> (i32, i32, i32) {
    %c0_i32 = arith.constant 0 : i32
    %c0_i32_0 = arith.constant 0 : i32
    return %arg0, %c0_i32, %arg1 : i32, i32, i32
  }
}

</mosaic_0001>

<bundles_post_ra>
// kernel: tpu_custom_call.1
= control target key start
LH: loop header
LB: loop body
LE: loop exit
PB: predicated region body
PF: predicated region fallthrough
CT: control target
= control target key end

     0   :  { %s2640_s0 = inlined_call_operand.vmem [shape: f32[2,6], index: 0, kind: input, shape index: {}]   ;;  %s2641_s1 = inlined_call_operand.<no memory space> [shape: s32[1], index: 1, kind: input, shape index: {}]   ;;  %s2642_s2 = inlined_call_operand.vmem [shape: f32[2,3,256], index: 2, kind: input, shape index: {}]   ;;  %s2643_s3 = inlined_call_operand.vmem [shape: f32[2,3,256], index: 3, kind: input, shape index: {}]   ;;  %s2644_s4 = inlined_call_operand.vmem [shape: f32[2,10,512], index: 4, kind: output, shape index: {}]  }
   0x1   :  { %9 = sst [smem:[#allocation3]] %s2641_s1 }
   0x2   :  { %10 = vsyncpa [#allocation5], 0  ;;  %s2130_s17 = smov 0   ;;  %s2132_s18 = smov 0  }
   0x3   :  { %s2134_s19 = smov 0  }
   0x4 LB: > { %s1553_s1 = sadd.s32 4294967295, %s2096_s19   ;;  %s35_s20 = sadd.s32 1, %s2092_s18  ;;  %s2096_s19 = sphi %s2134_s19, %s16_s19   ;;  %s2092_s18 = sphi %s2132_s18, %s2660_s18   ;;  %s2088_s17 = sphi %s2130_s17, %s2659_s17  }
   0x5   : > { %p37_p0 = scmp.ge.s32.totalorder %s35_s20, 2  ;;  %p1555_p1 = scmp.ge.s32.totalorder %s2096_s19, 1 }
   0x6   : > { %p166_p2 = scmp.lt.s32.totalorder %s2096_s19, 3  ;;  %p2155_p4 = scmp.eq.s32.totalorder %s1553_s1, 0 }
   0x7   : > { %s2662_s20 = smov (%p37_p0, %s35_s20), 0  ;;  %s179_s25 = sshll.u32 %s2640_s0, 4  ;;  %s180_s25 = int_to_ptr.vmem [resolvable:$true] %s179_s25 }
   0x8   : > { %p2151_p3 = pnand %p1555_p1, %p166_p2  ;;  %s2055_s26 = scalar_lea.vmem %s180_s25, 32 }
   0x9   : > { %p2056_p7 = scmp.ne.s32.totalorder %s180_s25, %s2055_s26  ;;  %p2063_p11 = scmp.lt.s32.totalorder %s180_s25, %s180_s25 }
   0xa   : > { %p2005_p5 = pneg %p2151_p3  ;;  %p2064_p12 = scmp.lt.s32.totalorder %s2055_s26, %s2055_s26 }
   0xc   : > { %p2006_p6 = pnand %p2155_p4, %p2005_p5  ;;  %p2065_p13 = por %p2064_p12, %p2063_p11 }
   0xe   : > { %p2057_p8 = pneg %p2006_p6 }
  0x10   : > { %p2058_p9 = pnand %p2057_p8, %p2056_p7 }
  0x12   : > { %p2059_p10 = pneg %p2058_p9 }
  0x14   : > { %p2066_p0 = pnand %p2065_p13, %p2059_p10 }
  0x16   : > { %2069 = shalt.err (!%p2066_p0)
}
  0x17   : > { %s2098_s27 = smov [#allocation4]   ;;  %221 = sbr.rel (%p2151_p3) target bundleno = 518 (0x206), region = 36 }
  0x18   : > { %2008 = dma.vmem_to_smem (!%p2006_p6), %s180_s25, 32, %s2098_s27, [#allocation5]  }
  0x1e   : > { %2083 = dma.done.wait (%p2155_p4), [#allocation5], 32  }
  0x1f   : > { %2085 = vsyncadd (%p2155_p4), [#allocation5], 4294967264 }
  0x20   : > { %227 = sfence }
  0x21   : > { %s1566_s28 = sshll.u32 %s2088_s17, 7  ;;  %p266_p1 = scmp.lt.s32.totalorder %s2088_s17, 1  ;;  %v305_v10 = vlaneseq  ;;  %v2099_v39 = vmov 0  }
  0x22   : > { %s2173_s29 = sld [smem:[#allocation4 + %s1566_s28]]  ;;  %s318_s30 = sadd.s32 3, %s1566_s28 }
  0x23   : > { %s319_s5 = sld [smem:[#allocation4 + %s318_s30]]  ;;  %s369_s6 = sadd.s32 1, %s1566_s28  ;;  %v2201_v15 = vand.u32 127, %v305_v10  ;;  %v2203_v16 = vshrl.u32 %v305_v10, 7 }
  0x24   : > { %s2175_s7 = sld [smem:[#allocation4 + %s369_s6]]  ;;  %s371_s8 = sadd.s32 4, %s1566_s28 }
  0x25   : > { %s372_s9 = sld [smem:[#allocation4 + %s371_s8]]  ;;  %s425_s10 = sadd.s32 2, %s1566_s28  ;;  %v2208_v25 = vadd.s32 128, %v2201_v15  ;;  %v2211_v26 = vsub.s32 0, %v2203_v16  ;;  %v2214_v29 = vsub.s32 4, %v2203_v16  ;;  %v392_v31 = vsub.s32 1, %v2203_v16 }
  0x26   : > { %s2177_s11 = sld [smem:[#allocation4 + %s425_s10]]  ;;  %s427_s12 = sadd.s32 5, %s1566_s28  ;;  %v396_v33 = vsub.s32 5, %v2203_v16  ;;  %v448_v35 = vsub.s32 2, %v2203_v16  ;;  %v2254_v60 = vsub.s32 6, %v2203_v16  ;;  %v526_v32 = vadd.s32 280, %v2203_v16 }
  0x27   : > { %s428_s13 = sld [smem:[#allocation4 + %s427_s12]]  ;;  %s2664_s17 = smov (!%p266_p1, %s2088_s17), 1  ;;  %v498_v38 = vadd.s32 56, %v2203_v16  ;;  %v501_v50 = vadd.s32 80, %v2203_v16 }
  0x28   : > { %s1842_s30 = sshll.u32 %s2664_s17, 3 }
  0x29   : > { %s320_s14 = ssub.f32 %s319_s5, %s2173_s29  ;;  %s273_s6 = scalar_lea.vmem %s2642_s2, %s1842_s30 }
  0x2a   : > { %v2195_v6 = vld [vmem:[%s273_s6] sm:$0x77] }
  0x2b   : > { %s323_s15 = smul.f32 0.125, %s320_s14  ;;  %s373_s16 = ssub.f32 %s372_s9, %s2175_s7  ;;  %v1014_v48 = vcombine.high %v2195_v6, %v2195_v6 }
  0x2c   : > { %s1844_s14 = sshll.u32 %s2664_s17, 6 }
  0x2d   : > { %s324_s1 = sadd.f32 1e-12, %s323_s15  ;;  %s376_s21 = smul.f32 0.125, %s373_s16 }
  0x2e   : > { %s429_s22 = ssub.f32 %s428_s13, %s2177_s11  ;;  %s283_s13 = scalar_lea.vmem %s2643_s3, %s1842_s30 }
  0x2f   : > { %v325_v0 = vstv %s324_s1  ;;  %s377_s23 = sadd.f32 1e-12, %s376_s21  ;;  %s2606_s1 = scalar_lea.vmem %s2644_s4, %s1844_s14 }
  0x30   : > { %2041 = vrcp.f32 %v325_v0  ;;  %s432_s24 = smul.f32 0.125, %s429_s22  ;;  %s328_s25 = ssub.f32 %s2173_s29, %s323_s15 }
  0x31   : > { %v378_v1 = vstv %s377_s23  ;;  %s381_s26 = ssub.f32 %s2175_s7, %s376_s21  ;;  %s2197_s7 = sld [smem:[#allocation3]] }
  0x32   : > { %2043 = vrcp.f32 %v378_v1  ;;  %s433_s27 = sadd.f32 1e-12, %s432_s24  ;;  %v329_v7 = vstv %s328_s25 }
  0x33   : > { %s437_s28 = ssub.f32 %s2177_s11, %s432_s24  ;;  %v382_v8 = vstv %s381_s26  ;;  %v330_v9 = vsub.f32 %v2195_v6, %v329_v7 }
  0x34   : > { %v434_v2 = vstv %s433_s27  ;;  %v383_v11 = vsub.f32 %v2195_v6, %v382_v8  ;;  %v510_v8 = vadd.s32 152, %v2203_v16 }
  0x35   : > { %2045 = vrcp.f32 %v434_v2  ;;  %v438_v12 = vstv %s437_s28 }
  0x36   : > { %v439_v18 = vsub.f32 %v2195_v6, %v438_v12 }
  0x37   : > { %v313_v21 = vstv %s2197_s7 }
  0x38   : > { %vm2218_vm0 = vcmp.lt.s32.totalorder %v2201_v15, %v313_v21  ;;  %vm2225_vm3 = vcmp.lt.s32.totalorder %v2208_v25, %v313_v21  ;;  %v523_v21 = vadd.s32 256, %v2203_v16 }
  0x3a   : > { %v2042_v3 = vpop.eup %2041 }
  0x3b   : > { %1973 = vpush %v2042_v3 }
  0x3c   : > { %v2044_v4 = vpop.eup %2043 }
  0x3d   : > { %1977 = vpush %v2044_v4 }
  0x3f   : > { %v2046_v5 = vpop.eup %2045 }
  0x40   : > { %1981 = vpush %v2046_v5 }
  0x6c   : > { %s1974_s8 = spop %1973 }
  0x6d   : > { %v331_v13 = vstv %s1974_s8 }
  0x6e   : > { %v332_v14 = vmul.f32 %v331_v13, %v330_v9  ;;  %s1978_s9 = spop %1977 }
  0x6f   : > { %v384_v17 = vstv %s1978_s9 }
  0x70   : > { %v333_v19 = vfloor.f32 %v332_v14  ;;  %v385_v20 = vmul.f32 %v384_v17, %v383_v11 }
  0x71   : > { %s1982_s10 = spop %1981 }
  0x72   : > { %v1975_v22 = vtrunc.f32 %v333_v19  ;;  %v386_v23 = vfloor.f32 %v385_v20  ;;  %v440_v24 = vstv %s1982_s10  ;;  %v492_v20 = vadd.s32 8, %v2203_v16 }
  0x73   : > { %v441_v27 = vmul.f32 %v440_v24, %v439_v18 }
  0x74   : > { %v1976_v28 = vcvt.f32.s32 %v1975_v22  ;;  %v1979_v30 = vtrunc.f32 %v386_v23  ;;  %v524_v22 = vadd.s32 264, %v2203_v16 }
  0x75   : > { %v442_v34 = vfloor.f32 %v441_v27 }
  0x76   : > { %vm335_vm1 = vcmp.ge.s32.totalorder %v1976_v28, 1  ;;  %vm349_vm2 = vcmp.le.s32.totalorder %v1976_v28, 8  ;;  %v1567_v36 = vadd.s32 4294967295, %v1976_v28  ;;  %v1980_v37 = vcvt.f32.s32 %v1979_v30 }
  0x77   : > { %v336_v40 = vsel %vm335_vm1, 1, %v2099_v39  ;;  %v350_v41 = vsel %vm349_vm2, 1, %v2099_v39  ;;  %v1983_v42 = vtrunc.f32 %v442_v34  ;;  %v493_v30 = vadd.s32 16, %v2203_v16 }
  0x78   : > { %v340_v43 = vrot.slane %v336_v40, %v2211_v26  ;;  %v344_v44 = vrot.slane %v336_v40, %v2214_v29  ;;  %v354_v45 = vrot.slane %v350_v41, %v2211_v26  ;;  %v358_v46 = vrot.slane %v350_v41, %v2214_v29 }
  0x79   : > { %vm364_vm4 = vcmp.gt.s32.totalorder %v1567_v36, 0  ;;  %vm388_vm5 = vcmp.ge.s32.totalorder %v1980_v37, 1  ;;  %vm402_vm6 = vcmp.le.s32.totalorder %v1980_v37, 8  ;;  %v1568_v47 = vadd.s32 4294967295, %v1980_v37 }
  0x7a   : > { %vm2233_vm7 = vcmp.ne.s32.totalorder %v340_v43, 0  ;;  %vm2237_vm8 = vcmp.ne.s32.totalorder %v344_v44, 0  ;;  %vm359_vm9 = vcmp.ne.s32.totalorder %v354_v45, 0  ;;  %vm2241_vm10 = vcmp.ne.s32.totalorder %v358_v46, 0  ;;  %v304_v43 = vld [vmem:[%s283_s13] sm:$0x77] }
  0x7b   : > { %vm347_vm11 = vmand %vm2218_vm0, %vm2233_vm7  ;;  %v365_v51 = vsel %vm364_vm4, %v1567_v36, 0  ;;  %v389_v52 = vsel %vm388_vm5, 1, %v2099_v39  ;;  %v403_v53 = vsel %vm402_vm6, 1, %v2099_v39  ;;  %vm417_vm12 = vcmp.gt.s32.totalorder %v1568_v47, 0 }
  0x7c   : > { %vm348_vm13 = vmand %vm2225_vm3, %vm2237_vm8  ;;  %vm366_vm14 = vcmp.lt.s32.totalorder %v365_v51, 7  ;;  %v393_v54 = vrot.slane %v389_v52, %v392_v31  ;;  %v397_v55 = vrot.slane %v389_v52, %v396_v33  ;;  %v407_v56 = vrot.slane %v403_v53, %v392_v31 }
  0x7d   : > { %vm361_vm15 = vmand %vm347_vm11, %vm359_vm9  ;;  %v411_v57 = vrot.slane %v403_v53, %v396_v33  ;;  %v418_v58 = vsel %vm417_vm12, %v1568_v47, 0  ;;  %v1984_v59 = vcvt.f32.s32 %v1983_v42  ;;  %v367_v61 = vsel %vm366_vm14, %v365_v51, 7 }
  0x7e   : > { %vm362_vm0 = vmand %vm348_vm13, %vm2241_vm10  ;;  %vm398_vm1 = vcmp.ne.s32.totalorder %v393_v54, 0  ;;  %vm399_vm2 = vcmp.ne.s32.totalorder %v397_v55, 0  ;;  %vm412_vm4 = vcmp.ne.s32.totalorder %v407_v56, 0  ;;  %vm419_vm6 = vcmp.lt.s32.totalorder %v418_v58, 7 }
  0x7f   : > { %vm400_vm5 = vmand %vm361_vm15, %vm398_vm1  ;;  %vm413_vm3 = vcmp.ne.s32.totalorder %v411_v57, 0  ;;  %vm444_vm7 = vcmp.ge.s32.totalorder %v1984_v59, 1  ;;  %vm458_vm8 = vcmp.le.s32.totalorder %v1984_v59, 8  ;;  %v420_v62 = vsel %vm419_vm6, %v418_v58, 7 }
  0x80   : > { %vm401_vm9 = vmand %vm362_vm0, %vm399_vm2  ;;  %v445_v63 = vsel %vm444_vm7, 1, %v2099_v39  ;;  %v459_v0 = vsel %vm458_vm8, 1, %v2099_v39  ;;  %v1570_v1 = vadd.s32 4294967295, %v1984_v59  ;;  %v421_v2 = vmul.u32 8, %v420_v62 }
  0x81   : > { %vm414_vm11 = vmand %vm400_vm5, %vm412_vm4  ;;  %v449_v3 = vrot.slane %v445_v63, %v448_v35  ;;  %v453_v4 = vrot.slane %v445_v63, %v2254_v60  ;;  %v463_v5 = vrot.slane %v459_v0, %v448_v35  ;;  %v368_v7 = vmul.u32 64, %v367_v61 }
  0x82   : > { %vm2260_vm10 = vmand %vm401_vm9, %vm413_vm3  ;;  %v467_v9 = vrot.slane %v459_v0, %v2254_v60  ;;  %vm473_vm12 = vcmp.gt.s32.totalorder %v1570_v1, 0  ;;  %v1569_v10 = vrot.slane %v421_v2, 9  ;;  %v494_v31 = vadd.s32 24, %v2203_v16 }
  0x83   : > { %vm454_vm13 = vcmp.ne.s32.totalorder %v449_v3, 0  ;;  %vm455_vm14 = vcmp.ne.s32.totalorder %v453_v4, 0  ;;  %vm468_vm15 = vcmp.ne.s32.totalorder %v463_v5, 0  ;;  %v474_v11 = vsel %vm473_vm12, %v1570_v1, 0 }
  0x84   : > { %vm456_vm0 = vmand %vm414_vm11, %vm454_vm13  ;;  %vm469_vm1 = vcmp.ne.s32.totalorder %v467_v9, 0  ;;  %v424_v12 = vadd.s32 %v1569_v10, %v368_v7  ;;  %vm475_vm4 = vcmp.lt.s32.totalorder %v474_v11, 7  ;;  %v495_v33 = vadd.s32 32, %v2203_v16 }
  0x85   : > { %vm457_vm2 = vmand %vm2260_vm10, %vm455_vm14  ;;  %v476_v13 = vsel %vm475_vm4, %v474_v11, 7  ;;  %v496_v34 = vadd.s32 40, %v2203_v16  ;;  %v527_v35 = vadd.s32 288, %v2203_v16  ;;  %v528_v36 = vadd.s32 296, %v2203_v16 }
  0x86   : > { %vm470_vm5 = vmand %vm456_vm0, %vm468_vm15  ;;  %v1571_v14 = vrot.slane %v476_v13, 10  ;;  %v497_v37 = vadd.s32 48, %v2203_v16  ;;  %v529_v39 = vadd.s32 304, %v2203_v16  ;;  %v530_v40 = vadd.s32 312, %v2203_v16 }
  0x87   : > { %vm471_vm3 = vmand %vm457_vm2, %vm469_vm1  ;;  %v499_v41 = vadd.s32 64, %v2203_v16  ;;  %v500_v42 = vadd.s32 72, %v2203_v16  ;;  %v531_v44 = vadd.s32 320, %v2203_v16  ;;  %v532_v45 = vadd.s32 328, %v2203_v16 }
  0x88   : > { %v479_v17 = vadd.s32 %v1571_v14, %v424_v12  ;;  %v2101_v46 = vmov 0.0   ;;  %v1017_v47 = vcombine.high %v304_v43, %v304_v43  ;;  %v502_v51 = vadd.s32 88, %v2203_v16 }
  0x89   : > { %299 = vst [vmem:[#allocation2] sm:$0x7f] %v2101_v46  ;;  %300 = vst [vmem:[#allocation2 + $0x8] sm:$0x7f] %v2101_v46  ;;  %v1018_v52 = vrot.slane %v304_v43, 5  ;;  %v533_v53 = vadd.s32 336, %v2203_v16  ;;  %v1235_v43 = vcvt.s32.f32 %v2201_v15 }
  0x8a   : > { %v483_v18 = vrot.slane %v479_v17, %v2211_v26  ;;  %v487_v19 = vrot.slane %v479_v17, %v2214_v29  ;;  %v525_v29 = vadd.s32 272, %v2203_v16  ;;  %301 = vst [vmem:[#allocation2 + $0x10] sm:$0x7f] %v2101_v46  ;;  %302 = vst [vmem:[#allocation2 + $0x18] sm:$0x7f] %v2101_v46  ;;  %v1019_v49 = vrot.slane %v1017_v47, 5 }
  0x8b   : > { %v534_v54 = vadd.s32 344, %v2203_v16  ;;  %v503_v58 = vadd.s32 96, %v2203_v16  ;;  %v535_v59 = vadd.s32 352, %v2203_v16  ;;  %v536_v61 = vadd.s32 360, %v2203_v16 }
  0x8c   : > { %v488_v23 = vsel %vm470_vm5, %v483_v18, 4294967295  ;;  %v489_v24 = vsel %vm471_vm3, %v487_v19, 4294967295  ;;  %v505_v62 = vadd.s32 112, %v2203_v16  ;;  %v506_v63 = vadd.s32 120, %v2203_v16 }
  0x8d   : > { %v2273_v27 = vrot.slane %v488_v23, %v2211_v26  ;;  %v2276_v28 = vrot.slane %v489_v24, %v2211_v26  ;;  %v2100_v26 = vmov 1.0|1.0   ;;  %v537_v0 = vadd.s32 368, %v2203_v16 }
  0x8e   : > { %v538_v1 = vadd.s32 376, %v2203_v16  ;;  %v507_v2 = vadd.s32 128, %v2203_v16  ;;  %v508_v3 = vadd.s32 136, %v2203_v16  ;;  %v539_v4 = vadd.s32 384, %v2203_v16 }
  0x8f   : > { %vm630_vm6 = vcmp.eq.s32.totalorder %v2203_v16, %v2276_v28  ;;  %vm632_vm7 = vcmp.eq.s32.totalorder %v492_v20, %v2276_v28  ;;  %vm694_vm8 = vcmp.eq.s32.totalorder %v523_v21, %v2276_v28  ;;  %vm696_vm9 = vcmp.eq.s32.totalorder %v524_v22, %v2276_v28 }
  0x90   : > { %vm1845_vm11 = vmpackc.low %vm632_vm7, %vm630_vm6  ;;  %vm629_vm10 = vcmp.eq.s32.totalorder %v2203_v16, %v2273_v27  ;;  %vm631_vm12 = vcmp.eq.s32.totalorder %v492_v20, %v2273_v27  ;;  %vm693_vm13 = vcmp.eq.s32.totalorder %v523_v21, %v2273_v27  ;;  %vm695_vm14 = vcmp.eq.s32.totalorder %v524_v22, %v2273_v27 }
  0x91   : > { %1846 = vmatprep.subr.msk.bf16.mxu0 %vm1845_vm11, %v2100_v26  ;;  %vm1909_vm15 = vmpackc.low %vm696_vm9, %vm694_vm8  ;;  %vm634_vm0 = vcmp.eq.s32.totalorder %v493_v30, %v2276_v28  ;;  %vm636_vm1 = vcmp.eq.s32.totalorder %v494_v31, %v2276_v28  ;;  %vm698_vm4 = vcmp.eq.s32.totalorder %v525_v29, %v2276_v28  ;;  %vm700_vm5 = vcmp.eq.s32.totalorder %v526_v32, %v2276_v28 }
  0x92   : > { %1910 = vmatprep.subr.msk.bf16.mxu1 %vm1909_vm15, %v2100_v26  ;;  %vm1847_vm2 = vmpackc.low %vm631_vm12, %vm629_vm10  ;;  %vm633_vm8 = vcmp.eq.s32.totalorder %v493_v30, %v2273_v27  ;;  %vm635_vm9 = vcmp.eq.s32.totalorder %v494_v31, %v2273_v27  ;;  %vm697_vm11 = vcmp.eq.s32.totalorder %v525_v29, %v2273_v27  ;;  %vm699_vm10 = vcmp.eq.s32.totalorder %v526_v32, %v2273_v27 }
  0x93   : > { %1848 = vmatpush1.bf16.xpose.msk.msra.mxu0 %vm1847_vm2, %v2100_v26  ;;  %vm1911_vm3 = vmpackc.low %vm695_vm14, %vm693_vm13  ;;  %vm638_vm12 = vcmp.eq.s32.totalorder %v495_v33, %v2276_v28  ;;  %vm640_vm13 = vcmp.eq.s32.totalorder %v496_v34, %v2276_v28  ;;  %vm702_vm15 = vcmp.eq.s32.totalorder %v527_v35, %v2276_v28  ;;  %v540_v5 = vadd.s32 392, %v2203_v16 }
  0x94   : > { %1912 = vmatpush1.bf16.xpose.msk.msra.mxu1 %vm1911_vm3, %v2100_v26  ;;  %vm1849_vm6 = vmpackc.low %vm636_vm1, %vm634_vm0  ;;  %vm704_vm0 = vcmp.eq.s32.totalorder %v528_v36, %v2276_v28  ;;  %vm639_vm3 = vcmp.eq.s32.totalorder %v496_v34, %v2273_v27  ;;  %v509_v7 = vadd.s32 144, %v2203_v16  ;;  %v541_v9 = vadd.s32 400, %v2203_v16 }
  0x95   : > { %1850 = vmatprep.subr.msk.bf16.mxu0 %vm1849_vm6, %v2100_v26  ;;  %vm1913_vm7 = vmpackc.low %vm700_vm5, %vm698_vm4  ;;  %vm637_vm5 = vcmp.eq.s32.totalorder %v495_v33, %v2273_v27  ;;  %vm701_vm6 = vcmp.eq.s32.totalorder %v527_v35, %v2273_v27  ;;  %v542_v10 = vadd.s32 408, %v2203_v16  ;;  %v511_v11 = vadd.s32 160, %v2203_v16 }
  0x96   : > { %1914 = vmatprep.subr.msk.bf16.mxu1 %vm1913_vm7, %v2100_v26  ;;  %vm1851_vm14 = vmpackc.low %vm635_vm9, %vm633_vm8  ;;  %vm703_vm7 = vcmp.eq.s32.totalorder %v528_v36, %v2273_v27  ;;  %vm642_vm8 = vcmp.eq.s32.totalorder %v497_v37, %v2276_v28  ;;  %vm644_vm9 = vcmp.eq.s32.totalorder %v498_v38, %v2276_v28  ;;  %v512_v12 = vadd.s32 168, %v2203_v16 }
  0x97   : > { %vm1915_vm1 = vmpackc.low %vm699_vm10, %vm697_vm11  ;;  %vm706_vm10 = vcmp.eq.s32.totalorder %v529_v39, %v2276_v28  ;;  %v543_v13 = vadd.s32 416, %v2203_v16  ;;  %v544_v14 = vadd.s32 424, %v2203_v16  ;;  %v513_v17 = vadd.s32 176, %v2203_v16 }
  0x98   : > { %vm1853_vm2 = vmpackc.low %vm640_vm13, %vm638_vm12  ;;  %vm708_vm12 = vcmp.eq.s32.totalorder %v530_v40, %v2276_v28  ;;  %v514_v18 = vadd.s32 184, %v2203_v16  ;;  %v545_v19 = vadd.s32 432, %v2203_v16  ;;  %v546_v20 = vadd.s32 440, %v2203_v16 }
  0x99   : > { %vm1917_vm4 = vmpackc.low %vm704_vm0, %vm702_vm15  ;;  %vm641_vm0 = vcmp.eq.s32.totalorder %v497_v37, %v2273_v27  ;;  %v515_v21 = vadd.s32 192, %v2203_v16  ;;  %v516_v22 = vadd.s32 200, %v2203_v16  ;;  %v547_v23 = vadd.s32 448, %v2203_v16 }
  0x9a   : > { %vm1855_vm11 = vmpackc.low %vm639_vm3, %vm637_vm5  ;;  %vm646_vm5 = vcmp.eq.s32.totalorder %v499_v41, %v2276_v28  ;;  %vm648_vm3 = vcmp.eq.s32.totalorder %v500_v42, %v2276_v28  ;;  %v548_v24 = vadd.s32 456, %v2203_v16  ;;  %v517_v30 = vadd.s32 208, %v2203_v16 }
  0x9b   : > { %1852 = vmatpush1.bf16.xpose.msk.msra.mxu0 %vm1851_vm14, %v2100_v26  ;;  %vm1919_vm13 = vmpackc.low %vm703_vm7, %vm701_vm6  ;;  %vm710_vm7 = vcmp.eq.s32.totalorder %v531_v44, %v2276_v28  ;;  %v518_v31 = vadd.s32 216, %v2203_v16  ;;  %v549_v29 = vadd.s32 464, %v2203_v16  ;;  %v550_v32 = vadd.s32 472, %v2203_v16 }
  0x9c   : > { %1916 = vmatpush1.bf16.xpose.msk.msra.mxu1 %vm1915_vm1, %v2100_v26  ;;  %1854 = vmatprep.subr.msk.bf16.mxu0 %vm1853_vm2, %v2100_v26  ;;  %vm1857_vm14 = vmpackc.low %vm644_vm9, %vm642_vm8  ;;  %vm643_vm1 = vcmp.eq.s32.totalorder %v498_v38, %v2273_v27  ;;  %vm705_vm2 = vcmp.eq.s32.totalorder %v529_v39, %v2273_v27  ;;  %vm712_vm8 = vcmp.eq.s32.totalorder %v532_v45, %v2276_v28  ;;  %v519_v33 = vadd.s32 224, %v2203_v16 }
  0x9d   : > { %1918 = vmatprep.subr.msk.bf16.mxu1 %vm1917_vm4, %v2100_v26  ;;  %vm1921_vm15 = vmpackc.low %vm708_vm12, %vm706_vm10  ;;  %vm707_vm4 = vcmp.eq.s32.totalorder %v530_v40, %v2273_v27  ;;  %vm1022_vm12 = vcmask 1042432   ;;  %v520_v34 = vadd.s32 232, %v2203_v16  ;;  %v551_v35 = vadd.s32 480, %v2203_v16 }
  0x9e   : > { %vm1859_vm6 = vmpackc.low %vm643_vm1, %vm641_vm0  ;;  %vm709_vm0 = vcmp.eq.s32.totalorder %v531_v44, %v2273_v27  ;;  %vm711_vm1 = vcmp.eq.s32.totalorder %v532_v45, %v2273_v27  ;;  %v1024_v55 = vsel %vm1022_vm12, %v1014_v48, %v1019_v49  ;;  %v2373_v57 = vsel %vm1022_vm12, %v2195_v6, %v1018_v52 }
  0x9f   : > { %vm1923_vm9 = vmpackc.low %vm707_vm4, %vm705_vm2  ;;  %vm650_vm2 = vcmp.eq.s32.totalorder %v501_v50, %v2276_v28  ;;  %vm652_vm4 = vcmp.eq.s32.totalorder %v502_v51, %v2276_v28  ;;  %v504_v6 = vadd.s32 104, %v2203_v16  ;;  %vm713_vm12 = vcmp.eq.s32.totalorder %v533_v53, %v2273_v27 }
  0xa0   : > { %vm1925_vm10 = vmpackc.low %vm712_vm8, %vm710_vm7  ;;  %v552_v36 = vadd.s32 488, %v2203_v16  ;;  %v521_v37 = vadd.s32 240, %v2203_v16  ;;  %v522_v38 = vadd.s32 248, %v2203_v16  ;;  %v553_v39 = vadd.s32 496, %v2203_v16 }
  0xa1   : > { %vm1927_vm7 = vmpackc.low %vm711_vm1, %vm709_vm0  ;;  %vm656_vm0 = vcmp.eq.s32.totalorder %v504_v6, %v2276_v28  ;;  %v554_v40 = vadd.s32 504, %v2203_v16  ;;  %v1239_v47 = vmul.f32 0.015625, %v1235_v43 }
  0xa2   : > { %vm1865_vm8 = vmpackc.low %vm652_vm4, %vm650_vm2  ;;  %vm718_vm2 = vcmp.eq.s32.totalorder %v535_v59, %v2276_v28  ;;  %vm720_vm4 = vcmp.eq.s32.totalorder %v536_v61, %v2276_v28 }
  0xa3   : > { %1856 = vmatpush1.bf16.xpose.msk.msra.mxu0 %vm1855_vm11, %v2100_v26  ;;  %vm1861_vm11 = vmpackc.low %vm648_vm3, %vm646_vm5  ;;  %vm714_vm3 = vcmp.eq.s32.totalorder %v533_v53, %v2276_v28 }
  0xa4   : > { %1920 = vmatpush1.bf16.xpose.msk.msra.mxu1 %vm1919_vm13, %v2100_v26  ;;  %1858 = vmatprep.subr.msk.bf16.mxu0 %vm1857_vm14, %v2100_v26  ;;  %vm1025_vm13 = vcmask 1045504   ;;  %vm645_vm14 = vcmp.eq.s32.totalorder %v499_v41, %v2273_v27  ;;  %v1230_v41 = vadd.s32 384, %v2201_v15 }
  0xa5   : > { %1922 = vmatprep.subr.msk.bf16.mxu1 %vm1921_vm15, %v2100_v26  ;;  %vm647_vm15 = vcmp.eq.s32.totalorder %v500_v42, %v2273_v27  ;;  %v1027_v56 = vsel %vm1025_vm13, %v1024_v55, 1.0  ;;  %v1026_v16 = vsel %vm1025_vm13, %v2373_v57, 1.0  ;;  %v1236_v42 = vcvt.s32.f32 %v2208_v25 }
  0xa6   : > { %vm1863_vm5 = vmpackc.low %vm647_vm15, %vm645_vm14  ;;  %1096 = vmatprep.mubr.f32.mxu0 %v1027_v56  ;;  %1167 = vmatprep.mubr.f32.mxu1 %v1027_v56  ;;  %vm715_vm14 = vcmp.eq.s32.totalorder %v534_v54, %v2273_v27  ;;  %vm654_vm15 = vcmp.eq.s32.totalorder %v503_v58, %v2276_v28  ;;  %v1238_v44 = vcvt.s32.f32 %v1230_v41 }
  0xa7   : > { %v1240_v45 = vmul.f32 0.015625, %v1236_v42 }
  0xa8   : > { %v1242_v49 = vmul.f32 0.015625, %v1238_v44 }
  0xaa   : > { %v1246_v52 = vfloor.f32 %v1242_v49 }
  0xab   : > { %1860 = vmatpush1.bf16.xpose.msk.msra.mxu0 %vm1859_vm6, %v2100_v26  ;;  %vm716_vm6 = vcmp.eq.s32.totalorder %v534_v54, %v2276_v28 }
  0xac   : > { %1924 = vmatpush1.bf16.xpose.msk.msra.mxu1 %vm1923_vm9, %v2100_v26  ;;  %1862 = vmatprep.subr.msk.bf16.mxu0 %vm1861_vm11, %v2100_v26  ;;  %vm1929_vm9 = vmpackc.low %vm716_vm6, %vm714_vm3  ;;  %vm649_vm11 = vcmp.eq.s32.totalorder %v501_v50, %v2273_v27  ;;  %v1243_v50 = vfloor.f32 %v1239_v47  ;;  %v1991_v56 = vtrunc.f32 %v1246_v52 }
  0xad   : > { %1926 = vmatprep.subr.msk.bf16.mxu1 %vm1925_vm10, %v2100_v26  ;;  %vm651_vm10 = vcmp.eq.s32.totalorder %v502_v51, %v2273_v27  ;;  %vm1869_vm3 = vmpackc.low %vm656_vm0, %vm654_vm15  ;;  %vm722_vm15 = vcmp.eq.s32.totalorder %v537_v0, %v2276_v28  ;;  %vm724_vm0 = vcmp.eq.s32.totalorder %v538_v1, %v2276_v28 }
  0xae   : > { %vm1867_vm1 = vmpackc.low %vm651_vm10, %vm649_vm11  ;;  %vm719_vm11 = vcmp.eq.s32.totalorder %v536_v61, %v2273_v27  ;;  %vm658_vm10 = vcmp.eq.s32.totalorder %v505_v62, %v2276_v28  ;;  %v1985_v54 = vtrunc.f32 %v1243_v50 }
  0xaf   : > { %vm1933_vm6 = vmpackc.low %vm720_vm4, %vm718_vm2 }
  0xb0   : > { %vm1937_vm4 = vmpackc.low %vm724_vm0, %vm722_vm15 }
  0xb3   : > { %1864 = vmatpush1.bf16.xpose.msk.msra.mxu0 %vm1863_vm5, %v2100_v26  ;;  %vm1931_vm5 = vmpackc.low %vm715_vm14, %vm713_vm12  ;;  %vm660_vm12 = vcmp.eq.s32.totalorder %v506_v63, %v2276_v28 }
  0xb4   : > { %1928 = vmatpush1.bf16.xpose.msk.msra.mxu1 %vm1927_vm7, %v2100_v26  ;;  %1866 = vmatprep.subr.msk.bf16.mxu0 %vm1865_vm8, %v2100_v26  ;;  %vm653_vm7 = vcmp.eq.s32.totalorder %v503_v58, %v2273_v27  ;;  %vm655_vm8 = vcmp.eq.s32.totalorder %v504_v6, %v2273_v27  ;;  %vm1873_vm2 = vmpackc.low %vm660_vm12, %vm658_vm10  ;;  %vm726_vm10 = vcmp.eq.s32.totalorder %v539_v4, %v2276_v28  ;;  %v1986_v58 = vcvt.f32.s32 %v1985_v54 }
  0xb5   : > { %1930 = vmatprep.subr.msk.bf16.mxu1 %vm1929_vm9, %v2100_v26  ;;  %vm717_vm9 = vcmp.eq.s32.totalorder %v535_v59, %v2273_v27  ;;  %vm1871_vm14 = vmpackc.low %vm655_vm8, %vm653_vm7  ;;  %vm723_vm7 = vcmp.eq.s32.totalorder %v538_v1, %v2273_v27  ;;  %vm662_vm8 = vcmp.eq.s32.totalorder %v507_v2, %v2276_v28  ;;  %vm728_vm12 = vcmp.eq.s32.totalorder %v540_v5, %v2276_v28 }
  0xb6   : > { %vm1941_vm0 = vmpackc.low %vm728_vm12, %vm726_vm10  ;;  %v1992_v59 = vcvt.f32.s32 %v1991_v56 }
  0xbb   : > { %1868 = vmatpush1.bf16.xpose.msk.msra.mxu0 %vm1867_vm1, %v2100_v26  ;;  %vm1935_vm1 = vmpackc.low %vm719_vm11, %vm717_vm9  ;;  %vm664_vm9 = vcmp.eq.s32.totalorder %v508_v3, %v2276_v28 }
  0xbc   : > { %1932 = vmatpush1.bf16.xpose.msk.msra.mxu1 %vm1931_vm5, %v2100_v26  ;;  %1870 = vmatprep.subr.msk.bf16.mxu0 %vm1869_vm3, %v2100_v26  ;;  %vm657_vm5 = vcmp.eq.s32.totalorder %v505_v62, %v2273_v27  ;;  %vm659_vm3 = vcmp.eq.s32.totalorder %v506_v63, %v2273_v27  ;;  %vm1877_vm15 = vmpackc.low %vm664_vm9, %vm662_vm8  ;;  %vm730_vm8 = vcmp.eq.s32.totalorder %v541_v9, %v2276_v28  ;;  %v1251_v62 = vmul.u32 64, %v1986_v58 }
  0xbd   : > { %1934 = vmatprep.subr.msk.bf16.mxu1 %vm1933_vm6, %v2100_v26  ;;  %vm721_vm6 = vcmp.eq.s32.totalorder %v537_v0, %v2273_v27  ;;  %vm1875_vm11 = vmpackc.low %vm659_vm3, %vm657_vm5  ;;  %vm727_vm5 = vcmp.eq.s32.totalorder %v540_v5, %v2273_v27  ;;  %vm666_vm3 = vcmp.eq.s32.totalorder %v509_v7, %v2276_v28  ;;  %vm732_vm9 = vcmp.eq.s32.totalorder %v542_v10, %v2276_v28 }
  0xbe   : > { %vm1945_vm12 = vmpackc.low %vm732_vm9, %vm730_vm8  ;;  %v1254_v0 = vmul.u32 64, %v1992_v59 }
  0xc3   : > { %1872 = vmatpush1.bf16.xpose.msk.msra.mxu0 %vm1871_vm14, %v2100_v26  ;;  %vm1939_vm14 = vmpackc.low %vm723_vm7, %vm721_vm6  ;;  %vm668_vm6 = vcmp.eq.s32.totalorder %v510_v8, %v2276_v28 }
  0xc4   : > { %1936 = vmatpush1.bf16.xpose.msk.msra.mxu1 %vm1935_vm1, %v2100_v26  ;;  %1874 = vmatprep.subr.msk.bf16.mxu0 %vm1873_vm2, %v2100_v26  ;;  %vm661_vm1 = vcmp.eq.s32.totalorder %v507_v2, %v2273_v27  ;;  %vm663_vm2 = vcmp.eq.s32.totalorder %v508_v3, %v2273_v27  ;;  %vm1881_vm10 = vmpackc.low %vm668_vm6, %vm666_vm3  ;;  %vm734_vm3 = vcmp.eq.s32.totalorder %v543_v13, %v2276_v28  ;;  %v1832_v2 = vadd.s32 4294967295, %v1986_v58 }
  0xc5   : > { %1938 = vmatprep.subr.msk.bf16.mxu1 %vm1937_vm4, %v2100_v26  ;;  %vm725_vm4 = vcmp.eq.s32.totalorder %v539_v4, %v2273_v27  ;;  %vm1879_vm7 = vmpackc.low %vm663_vm2, %vm661_vm1  ;;  %vm731_vm1 = vcmp.eq.s32.totalorder %v542_v10, %v2273_v27  ;;  %vm670_vm2 = vcmp.eq.s32.totalorder %v511_v11, %v2276_v28  ;;  %vm736_vm6 = vcmp.eq.s32.totalorder %v544_v14, %v2276_v28 }
  0xc6   : > { %vm1949_vm9 = vmpackc.low %vm736_vm6, %vm734_vm3  ;;  %v1835_v4 = vadd.s32 4294967295, %v1992_v59 }
  0xcb   : > { %1876 = vmatpush1.bf16.xpose.msk.msra.mxu0 %vm1875_vm11, %v2100_v26  ;;  %vm1943_vm11 = vmpackc.low %vm727_vm5, %vm725_vm4  ;;  %vm672_vm4 = vcmp.eq.s32.totalorder %v512_v12, %v2276_v28 }
  0xcc   : > { %1940 = vmatpush1.bf16.xpose.msk.msra.mxu1 %vm1939_vm14, %v2100_v26  ;;  %1878 = vmatprep.subr.msk.bf16.mxu0 %vm1877_vm15, %v2100_v26  ;;  %vm665_vm14 = vcmp.eq.s32.totalorder %v509_v7, %v2273_v27  ;;  %vm667_vm15 = vcmp.eq.s32.totalorder %v510_v8, %v2273_v27  ;;  %vm1885_vm8 = vmpackc.low %vm672_vm4, %vm670_vm2  ;;  %vm738_vm2 = vcmp.eq.s32.totalorder %v545_v19, %v2276_v28 }
  0xcd   : > { %1942 = vmatprep.subr.msk.bf16.mxu1 %vm1941_vm0, %v2100_v26  ;;  %vm729_vm0 = vcmp.eq.s32.totalorder %v541_v9, %v2273_v27  ;;  %vm1883_vm5 = vmpackc.low %vm667_vm15, %vm665_vm14  ;;  %vm735_vm14 = vcmp.eq.s32.totalorder %v544_v14, %v2273_v27  ;;  %vm674_vm15 = vcmp.eq.s32.totalorder %v513_v17, %v2276_v28  ;;  %vm740_vm4 = vcmp.eq.s32.totalorder %v546_v20, %v2276_v28 }
  0xce   : > { %vm1953_vm6 = vmpackc.low %vm740_vm4, %vm738_vm2 }
  0xd3   : > { %1880 = vmatpush1.bf16.xpose.msk.msra.mxu0 %vm1879_vm7, %v2100_v26  ;;  %vm1947_vm7 = vmpackc.low %vm731_vm1, %vm729_vm0  ;;  %vm676_vm0 = vcmp.eq.s32.totalorder %v514_v18, %v2276_v28 }
  0xd4   : > { %1944 = vmatpush1.bf16.xpose.msk.msra.mxu1 %vm1943_vm11, %v2100_v26  ;;  %1882 = vmatprep.subr.msk.bf16.mxu0 %vm1881_vm10, %v2100_v26  ;;  %vm669_vm11 = vcmp.eq.s32.totalorder %v511_v11, %v2273_v27  ;;  %vm671_vm10 = vcmp.eq.s32.totalorder %v512_v12, %v2273_v27  ;;  %vm1889_vm3 = vmpackc.low %vm676_vm0, %vm674_vm15  ;;  %vm742_vm15 = vcmp.eq.s32.totalorder %v547_v23, %v2276_v28 }
  0xd5   : > { %1946 = vmatprep.subr.msk.bf16.mxu1 %vm1945_vm12, %v2100_v26  ;;  %vm733_vm12 = vcmp.eq.s32.totalorder %v543_v13, %v2273_v27  ;;  %vm1887_vm1 = vmpackc.low %vm671_vm10, %vm669_vm11  ;;  %vm739_vm11 = vcmp.eq.s32.totalorder %v546_v20, %v2273_v27  ;;  %vm678_vm10 = vcmp.eq.s32.totalorder %v515_v21, %v2276_v28  ;;  %vm744_vm0 = vcmp.eq.s32.totalorder %v548_v24, %v2276_v28 }
  0xd6   : > { %vm1957_vm4 = vmpackc.low %vm744_vm0, %vm742_vm15 }
  0xdb   : > { %1884 = vmatpush1.bf16.xpose.msk.msra.mxu0 %vm1883_vm5, %v2100_v26  ;;  %vm1951_vm5 = vmpackc.low %vm735_vm14, %vm733_vm12  ;;  %vm680_vm12 = vcmp.eq.s32.totalorder %v516_v22, %v2276_v28 }
  0xdc   : > { %1948 = vmatpush1.bf16.xpose.msk.msra.mxu1 %vm1947_vm7, %v2100_v26  ;;  %1886 = vmatprep.subr.msk.bf16.mxu0 %vm1885_vm8, %v2100_v26  ;;  %vm673_vm7 = vcmp.eq.s32.totalorder %v513_v17, %v2273_v27  ;;  %vm675_vm8 = vcmp.eq.s32.totalorder %v514_v18, %v2273_v27  ;;  %vm1893_vm2 = vmpackc.low %vm680_vm12, %vm678_vm10  ;;  %vm746_vm10 = vcmp.eq.s32.totalorder %v549_v29, %v2276_v28 }
  0xdd   : > { %1950 = vmatprep.subr.msk.bf16.mxu1 %vm1949_vm9, %v2100_v26  ;;  %vm737_vm9 = vcmp.eq.s32.totalorder %v545_v19, %v2273_v27  ;;  %vm1891_vm14 = vmpackc.low %vm675_vm8, %vm673_vm7  ;;  %vm743_vm7 = vcmp.eq.s32.totalorder %v548_v24, %v2273_v27  ;;  %vm682_vm8 = vcmp.eq.s32.totalorder %v517_v30, %v2276_v28  ;;  %vm748_vm12 = vcmp.eq.s32.totalorder %v550_v32, %v2276_v28 }
  0xde   : > { %vm1961_vm0 = vmpackc.low %vm748_vm12, %vm746_vm10 }
  0xe3   : > { %1888 = vmatpush1.bf16.xpose.msk.msra.mxu0 %vm1887_vm1, %v2100_v26  ;;  %vm1955_vm1 = vmpackc.low %vm739_vm11, %vm737_vm9  ;;  %vm684_vm9 = vcmp.eq.s32.totalorder %v518_v31, %v2276_v28 }
  0xe4   : > { %1952 = vmatpush1.bf16.xpose.msk.msra.mxu1 %vm1951_vm5, %v2100_v26  ;;  %1890 = vmatprep.subr.msk.bf16.mxu0 %vm1889_vm3, %v2100_v26  ;;  %vm677_vm5 = vcmp.eq.s32.totalorder %v515_v21, %v2273_v27  ;;  %vm679_vm3 = vcmp.eq.s32.totalorder %v516_v22, %v2273_v27  ;;  %vm1897_vm15 = vmpackc.low %vm684_vm9, %vm682_vm8  ;;  %vm750_vm8 = vcmp.eq.s32.totalorder %v551_v35, %v2276_v28 }
  0xe5   : > { %1954 = vmatprep.subr.msk.bf16.mxu1 %vm1953_vm6, %v2100_v26  ;;  %vm741_vm6 = vcmp.eq.s32.totalorder %v547_v23, %v2273_v27  ;;  %vm1895_vm11 = vmpackc.low %vm679_vm3, %vm677_vm5  ;;  %vm747_vm5 = vcmp.eq.s32.totalorder %v550_v32, %v2273_v27  ;;  %vm686_vm3 = vcmp.eq.s32.totalorder %v519_v33, %v2276_v28  ;;  %vm752_vm9 = vcmp.eq.s32.totalorder %v552_v36, %v2276_v28 }
  0xe6   : > { %vm1965_vm12 = vmpackc.low %vm752_vm9, %vm750_vm8 }
  0xeb   : > { %1892 = vmatpush1.bf16.xpose.msk.msra.mxu0 %vm1891_vm14, %v2100_v26  ;;  %vm1959_vm14 = vmpackc.low %vm743_vm7, %vm741_vm6  ;;  %vm688_vm6 = vcmp.eq.s32.totalorder %v520_v34, %v2276_v28 }
  0xec   : > { %1956 = vmatpush1.bf16.xpose.msk.msra.mxu1 %vm1955_vm1, %v2100_v26  ;;  %1894 = vmatprep.subr.msk.bf16.mxu0 %vm1893_vm2, %v2100_v26  ;;  %vm681_vm1 = vcmp.eq.s32.totalorder %v517_v30, %v2273_v27  ;;  %vm683_vm2 = vcmp.eq.s32.totalorder %v518_v31, %v2273_v27  ;;  %vm1901_vm10 = vmpackc.low %vm688_vm6, %vm686_vm3  ;;  %vm754_vm3 = vcmp.eq.s32.totalorder %v553_v39, %v2276_v28 }
  0xed   : > { %1958 = vmatprep.subr.msk.bf16.mxu1 %vm1957_vm4, %v2100_v26  ;;  %vm745_vm4 = vcmp.eq.s32.totalorder %v549_v29, %v2273_v27  ;;  %vm1899_vm7 = vmpackc.low %vm683_vm2, %vm681_vm1  ;;  %vm751_vm1 = vcmp.eq.s32.totalorder %v552_v36, %v2273_v27  ;;  %vm690_vm2 = vcmp.eq.s32.totalorder %v521_v37, %v2276_v28  ;;  %vm756_vm6 = vcmp.eq.s32.totalorder %v554_v40, %v2276_v28 }
  0xee   : > { %vm1969_vm9 = vmpackc.low %vm756_vm6, %vm754_vm3 }
  0xf3   : > { %1896 = vmatpush1.bf16.xpose.msk.msra.mxu0 %vm1895_vm11, %v2100_v26  ;;  %vm1963_vm11 = vmpackc.low %vm747_vm5, %vm745_vm4  ;;  %vm692_vm4 = vcmp.eq.s32.totalorder %v522_v38, %v2276_v28  ;;  %v1229_v28 = vadd.s32 256, %v2201_v15 }
  0xf4   : > { %1960 = vmatpush1.bf16.xpose.msk.msra.mxu1 %vm1959_vm14, %v2100_v26  ;;  %1898 = vmatprep.subr.msk.bf16.mxu0 %vm1897_vm15, %v2100_v26  ;;  %vm685_vm14 = vcmp.eq.s32.totalorder %v519_v33, %v2273_v27  ;;  %vm687_vm15 = vcmp.eq.s32.totalorder %v520_v34, %v2273_v27  ;;  %vm1905_vm8 = vmpackc.low %vm692_vm4, %vm690_vm2  ;;  %vm1255_vm2 = vcmp.gt.s32.totalorder %v1251_v62, %v2201_v15 }
  0xf5   : > { %1962 = vmatprep.subr.msk.bf16.mxu1 %vm1961_vm0, %v2100_v26  ;;  %vm749_vm0 = vcmp.eq.s32.totalorder %v551_v35, %v2273_v27  ;;  %vm1903_vm5 = vmpackc.low %vm687_vm15, %vm685_vm14  ;;  %vm755_vm14 = vcmp.eq.s32.totalorder %v554_v40, %v2273_v27  ;;  %v1263_v7 = vsel %vm1255_vm2, %v1832_v2, %v1986_v58  ;;  %vm1359_vm2 = vcmask 1040384  }
  0xf6   : > { %v1267_v11 = vadd.s32 1, %v1263_v7 }
  0xf8   : > { %v1271_v17 = vmul.u32 64, %v1267_v11 }
  0xfa   : > { %vm1275_vm6 = vcmp.le.s32.totalorder %v1271_v17, %v2201_v15 }
  0xfb   : > { %1900 = vmatpush1.bf16.xpose.msk.msra.mxu0 %vm1899_vm7, %v2100_v26  ;;  %vm1967_vm7 = vmpackc.low %vm751_vm1, %vm749_vm0  ;;  %v2559_v21 = vsel %vm1275_vm6, %v1267_v11, %v1263_v7 }
  0xfc   : > { %1964 = vmatpush1.bf16.xpose.msk.msra.mxu1 %vm1963_vm11, %v2100_v26  ;;  %1902 = vmatprep.subr.msk.bf16.mxu0 %vm1901_vm10, %v2100_v26  ;;  %vm689_vm11 = vcmp.eq.s32.totalorder %v521_v37, %v2273_v27  ;;  %vm691_vm10 = vcmp.eq.s32.totalorder %v522_v38, %v2273_v27  ;;  %v1283_v30 = vmul.u32 64, %v2559_v21 }
  0xfd   : > { %1966 = vmatprep.subr.msk.bf16.mxu1 %vm1965_vm12, %v2100_v26  ;;  %vm753_vm12 = vcmp.eq.s32.totalorder %v553_v39, %v2273_v27  ;;  %vm1907_vm15 = vmpackc.low %vm691_vm10, %vm689_vm11  ;;  %v1237_v27 = vcvt.s32.f32 %v1229_v28 }
  0xfe   : > { %vm1971_vm0 = vmpackc.low %vm755_vm14, %vm753_vm12  ;;  %v2571_v33 = vsub.s32 %v2201_v15, %v1283_v30  ;;  %v1347_v30 = vcvt.s32.f32 %v2559_v21  ;;  %v1030_v21 = vld [vmem:[#allocation2 + $0x10] sm:$0x7f] }
  0xff   : > { %v1241_v48 = vmul.f32 0.015625, %v1237_v27 }
 0x100   : > { %v1291_v37 = vcvt.s32.f32 %v2571_v33 }
 0x101   : > { %v1245_v51 = vfloor.f32 %v1241_v48 }
 0x103   : > { %1904 = vmatpush1.bf16.xpose.msk.msra.mxu0 %vm1903_vm5, %v2100_v26  ;;  %v1989_v55 = vtrunc.f32 %v1245_v51  ;;  %vm1258_vm5 = vcmp.gt.s32.totalorder %v1254_v0, %v1230_v41 }
 0x104   : > { %1968 = vmatpush1.bf16.xpose.msk.msra.mxu1 %vm1967_vm7, %v2100_v26  ;;  %1906 = vmatprep.subr.msk.bf16.mxu0 %vm1905_vm8, %v2100_v26  ;;  %v1266_v9 = vsel %vm1258_vm5, %v1835_v4, %v1992_v59 }
 0x105   : > { %1970 = vmatprep.subr.msk.bf16.mxu1 %vm1969_vm9, %v2100_v26  ;;  %v1990_v6 = vcvt.f32.s32 %v1989_v55  ;;  %v1270_v13 = vadd.s32 1, %v1266_v9 }
 0x107   : > { %v1253_v63 = vmul.u32 64, %v1990_v6  ;;  %v1834_v3 = vadd.s32 4294967295, %v1990_v6  ;;  %v1274_v19 = vmul.u32 64, %v1270_v13 }
 0x109   : > { %vm1257_vm4 = vcmp.gt.s32.totalorder %v1253_v63, %v1229_v28  ;;  %vm1278_vm8 = vcmp.le.s32.totalorder %v1274_v19, %v1230_v41 }
 0x10a   : > { %v1265_v8 = vsel %vm1257_vm4, %v1834_v3, %v1990_v6  ;;  %v2563_v23 = vsel %vm1278_vm8, %v1270_v13, %v1266_v9  ;;  %vm1364_vm4 = vcmask 1041408  }
 0x10b   : > { %1908 = vmatpush1.bf16.xpose.msk.msra.mxu0 %vm1907_vm15, %v2100_v26  ;;  %v1269_v12 = vadd.s32 1, %v1265_v8  ;;  %v1286_v29 = vmul.u32 64, %v2563_v23 }
 0x10c   : > { %1972 = vmatpush1.bf16.xpose.msk.msra.mxu1 %vm1971_vm0, %v2100_v26  ;;  %v1244_v26 = vfloor.f32 %v1240_v45 }
 0x10d   : > { %v1273_v18 = vmul.u32 64, %v1269_v12  ;;  %v2575_v35 = vsub.s32 %v1230_v41, %v1286_v29 }
 0x10e   : > { %v1987_v53 = vtrunc.f32 %v1244_v26 }
 0x10f   : > { %vm1277_vm7 = vcmp.le.s32.totalorder %v1273_v18, %v1229_v28  ;;  %v1294_v39 = vcvt.s32.f32 %v2575_v35 }
 0x110   : > { %v1988_v57 = vcvt.f32.s32 %v1987_v53  ;;  %v2561_v22 = vsel %vm1277_vm7, %v1269_v12, %v1265_v8 }
 0x111   : > { %v1285_v31 = vmul.u32 64, %v2561_v22  ;;  %v1298_v43 = vmul.f32 0.125, %v1294_v39 }
 0x112   : > { %1097 = vmatmul.mubr.f32.vlgmr.msra.gmra.mrb[0].mxu0 %v1026_v16  ;;  %v1252_v61 = vmul.u32 64, %v1988_v57  ;;  %v1833_v1 = vadd.s32 4294967295, %v1988_v57 }
 0x113   : > { %1168 = vmatmul.mubr.f32.vlgmr.msra.gmra.mrb[0].mxu1 %v1026_v16  ;;  %v2573_v34 = vsub.s32 %v1229_v28, %v1285_v31  ;;  %v1295_v16 = vmul.f32 0.125, %v1291_v37  ;;  %v1302_v15 = vfloor.f32 %v1298_v43 }
 0x114   : > { %vm1256_vm1 = vcmp.gt.s32.totalorder %v1252_v61, %v2208_v25 }
 0x115   : > { %v1264_v5 = vsel %vm1256_vm1, %v1833_v1, %v1988_v57  ;;  %v1293_v38 = vcvt.s32.f32 %v2573_v34  ;;  %v1999_v41 = vtrunc.f32 %v1302_v15 }
 0x116   : > { %v1268_v10 = vadd.s32 1, %v1264_v5 }
 0x117   : > { %v1297_v42 = vmul.f32 0.125, %v1293_v38  ;;  %v2000_v50 = vcvt.f32.s32 %v1999_v41 }
 0x118   : > { %v1272_v14 = vmul.u32 64, %v1268_v10 }
 0x119   : > { %v1301_v44 = vfloor.f32 %v1297_v42  ;;  %v1310_v54 = vmul.u32 8, %v2000_v50  ;;  %v1839_v58 = vadd.s32 4294967295, %v2000_v50 }
 0x11a   : > { %vm1276_vm3 = vcmp.le.s32.totalorder %v1272_v14, %v2208_v25 }
 0x11b   : > { %v2557_v20 = vsel %vm1276_vm3, %v1268_v10, %v1264_v5  ;;  %v1997_v47 = vtrunc.f32 %v1301_v44  ;;  %vm1314_vm12 = vcmp.gt.s32.totalorder %v1310_v54, %v2575_v35  ;;  %v1031_v44 = vld [vmem:[#allocation2 + $0x18] sm:$0x7f] }
 0x11c   : > { %v1284_v24 = vmul.u32 64, %v2557_v20  ;;  %v1322_v62 = vsel %vm1314_vm12, %v1839_v58, %v2000_v50  ;;  %v1348_v19 = vcvt.s32.f32 %v2557_v20 }
 0x11d   : > { %v1998_v26 = vcvt.f32.s32 %v1997_v47  ;;  %v1326_v2 = vadd.s32 1, %v1322_v62 }
 0x11e   : > { %v1288_v32 = vsub.s32 %v2208_v25, %v1284_v24  ;;  %v1299_v25 = vfloor.f32 %v1295_v16 }
 0x11f   : > { %v1309_v53 = vmul.u32 8, %v1998_v26  ;;  %v1838_v57 = vadd.s32 4294967295, %v1998_v26  ;;  %v1330_v7 = vmul.u32 8, %v1326_v2 }
 0x120   : > { %v1292_v36 = vcvt.s32.f32 %v1288_v32  ;;  %v1993_v28 = vtrunc.f32 %v1299_v25 }
 0x121   : > { %vm1313_vm10 = vcmp.gt.s32.totalorder %v1309_v53, %v2573_v34  ;;  %vm1334_vm1 = vcmp.le.s32.totalorder %v1330_v7, %v2575_v35 }
 0x122   : > { %v1296_v40 = vmul.f32 0.125, %v1292_v36  ;;  %v1994_v49 = vcvt.f32.s32 %v1993_v28  ;;  %v1321_v61 = vsel %vm1313_vm10, %v1838_v57, %v1998_v26  ;;  %v1338_v11 = vsel %vm1334_vm1, %v1326_v2, %v1322_v62 }
 0x123   : > { %v1325_v1 = vadd.s32 1, %v1321_v61  ;;  %v1342_v17 = vmul.u32 8, %v1338_v11  ;;  %v1349_v36 = vcvt.s32.f32 %v2561_v22  ;;  %v1354_v16 = vcvt.s32.f32 %v1338_v11 }
 0x124   : > { %v1300_v27 = vfloor.f32 %v1296_v40  ;;  %v1307_v52 = vmul.u32 8, %v1994_v49  ;;  %v1836_v56 = vadd.s32 4294967295, %v1994_v49  ;;  %v1350_v40 = vcvt.s32.f32 %v2563_v23 }
 0x125   : > { %v1329_v5 = vmul.u32 8, %v1325_v1  ;;  %v1346_v37 = vsub.s32 %v2575_v35, %v1342_v17 }
 0x126   : > { %v1995_v45 = vtrunc.f32 %v1300_v27  ;;  %vm1311_vm11 = vcmp.gt.s32.totalorder %v1307_v52, %v2571_v33  ;;  %v1363_v15 = vsel %vm1359_vm2, %v1350_v40, %v1354_v16 }
 0x127   : > { %v1319_v59 = vsel %vm1311_vm11, %v1836_v56, %v1994_v49  ;;  %vm1333_vm0 = vcmp.le.s32.totalorder %v1329_v5, %v2573_v34  ;;  %v1358_v25 = vcvt.s32.f32 %v1346_v37 }
 0x128   : > { %v1996_v48 = vcvt.f32.s32 %v1995_v45  ;;  %v1323_v0 = vadd.s32 1, %v1319_v59  ;;  %v1337_v10 = vsel %vm1333_vm0, %v1325_v1, %v1321_v61 }
 0x129   : > { %v1341_v14 = vmul.u32 8, %v1337_v10  ;;  %v1353_v39 = vcvt.s32.f32 %v1337_v10  ;;  %v1368_v52 = vsel %vm1364_vm4, %v1363_v15, %v1358_v25 }
 0x12a   : > { %v1308_v51 = vmul.u32 8, %v1996_v48  ;;  %v1837_v55 = vadd.s32 4294967295, %v1996_v48  ;;  %v1327_v4 = vmul.u32 8, %v1323_v0  ;;  %v1372_v56 = vmul.f32 0.125, %v1368_v52 }
 0x12b   : > { %v1345_v29 = vsub.s32 %v2573_v34, %v1341_v14  ;;  %v1362_v35 = vsel %vm1359_vm2, %v1349_v36, %v1353_v39 }
 0x12c   : > { %vm1312_vm9 = vcmp.gt.s32.totalorder %v1308_v51, %v1288_v32  ;;  %vm1331_vm15 = vcmp.le.s32.totalorder %v1327_v4, %v2571_v33  ;;  %v1380_v61 = vrot.slane %v1372_v56, 2 }
 0x12d   : > { %v1320_v6 = vsel %vm1312_vm9, %v1837_v55, %v1996_v48  ;;  %v1335_v9 = vsel %vm1331_vm15, %v1323_v0, %v1319_v59  ;;  %v1357_v27 = vcvt.s32.f32 %v1345_v29 }
 0x12e   : > { %v1324_v63 = vadd.s32 1, %v1320_v6  ;;  %v1339_v13 = vmul.u32 8, %v1335_v9  ;;  %v1351_v38 = vcvt.s32.f32 %v1335_v9 }
 0x12f   : > { %v1367_v50 = vsel %vm1364_vm4, %v1362_v35, %v1357_v27 }
 0x130   : > { %v1328_v3 = vmul.u32 8, %v1324_v63  ;;  %v1343_v31 = vsub.s32 %v2571_v33, %v1339_v13  ;;  %v1029_v33 = vld [vmem:[#allocation2 + $0x8] sm:$0x7f]  ;;  %v1360_v22 = vsel %vm1359_vm2, %v1347_v30, %v1351_v38  ;;  %v1371_v55 = vmul.f32 0.125, %v1367_v50 }
 0x132   : > { %vm1332_vm14 = vcmp.le.s32.totalorder %v1328_v3, %v1288_v32  ;;  %v1355_v43 = vcvt.s32.f32 %v1343_v31 }
 0x133   : > { %v1336_v8 = vsel %vm1332_vm14, %v1324_v63, %v1320_v6  ;;  %v1379_v6 = vrot.slane %v1371_v55, 2 }
 0x134   : > { %v1340_v12 = vmul.u32 8, %v1336_v8  ;;  %v1352_v24 = vcvt.s32.f32 %v1336_v8  ;;  %v1365_v26 = vsel %vm1364_vm4, %v1360_v22, %v1355_v43 }
 0x135   : > { %v1369_v54 = vmul.f32 0.125, %v1365_v26 }
 0x136   : > { %v1344_v18 = vsub.s32 %v1288_v32, %v1340_v12  ;;  %v1028_v32 = vld [vmem:[#allocation2] sm:$0x7f]  ;;  %v1361_v20 = vsel %vm1359_vm2, %v1348_v19, %v1352_v24 }
 0x137   : > { %v1377_v58 = vrot.slane %v1369_v54, 2 }
 0x138   : > { %v1356_v42 = vcvt.s32.f32 %v1344_v18 }
 0x13a   : > { %v1366_v47 = vsel %vm1364_vm4, %v1361_v20, %v1356_v42 }
 0x13b   : > { %v1370_v53 = vmul.f32 0.125, %v1366_v47 }
 0x13d   : > { %v1378_v59 = vrot.slane %v1370_v53, 2 }
 0x1e5   : > { %v1098_v34 = vpop.f32.mrb[0].mxu0 }
 0x1e6   : > { %v1174_v23 = vadd.f32 %v1098_v34, %v1028_v32  ;;  %v1169_v45 = vpop.f32.mrb[0].mxu1  ;;  %v1100_v28 = vpop.f32.mrb[1].mxu0 }
 0x1e7   : > { %v1176_v41 = vadd.f32 %v1169_v45, %v1030_v21  ;;  %v1175_v48 = vadd.f32 %v1100_v28, %v1029_v33  ;;  %v1171_v49 = vpop.f32.mrb[1].mxu1 }
 0x1e8   : > { %1178 = vst [vmem:[#allocation2] sm:$0x7f] %v1174_v23  ;;  %v1177_v51 = vadd.f32 %v1171_v49, %v1031_v44 }
 0x1e9   : > { %1180 = vst [vmem:[#allocation2 + $0x10] sm:$0x7f] %v1176_v41  ;;  %1179 = vst [vmem:[#allocation2 + $0x8] sm:$0x7f] %v1175_v48 }
 0x1ea   : > { %1181 = vst [vmem:[#allocation2 + $0x18] sm:$0x7f] %v1177_v51 }
 0x1ef   : > { %v1185_v57 = vld [vmem:[#allocation2] sm:$0x7f] }
 0x1f0   : > { %v1189_v62 = vmax.f32 %v1185_v57, 1.0  ;;  %vm1217_vm5 = vcmp.gt.f32.partialorder %v1185_v57, 0.0  ;;  %v1187_v63 = vld [vmem:[#allocation2 + $0x10] sm:$0x7f]  ;;  %v1186_v0 = vld [vmem:[#allocation2 + $0x8] sm:$0x7f] }
 0x1f1   : > { %v1828_v1 = vsel %vm1217_vm5, 1.0, %v2101_v46  ;;  %v1191_v2 = vmax.f32 %v1187_v63, 1.0  ;;  %vm1219_vm3 = vcmp.gt.f32.partialorder %v1187_v63, 0.0  ;;  %v1190_v3 = vmax.f32 %v1186_v0, 1.0  ;;  %v1188_v4 = vld [vmem:[#allocation2 + $0x18] sm:$0x7f] }
 0x1f2   : > { %2047 = vrcp.f32 %v1189_v62  ;;  %v1389_v5 = vrot.slane %v1828_v1, 5  ;;  %v1830_v7 = vsel %vm1219_vm3, 1.0, %v2101_v46  ;;  %vm1218_vm6 = vcmp.gt.f32.partialorder %v1186_v0, 0.0 }
 0x1f3   : > { %2049 = vrcp.f32 %v1191_v2  ;;  %v1391_v8 = vrot.slane %v1830_v7, 5  ;;  %v1829_v9 = vsel %vm1218_vm6, 1.0, %v2101_v46  ;;  %v1192_v10 = vmax.f32 %v1188_v4, 1.0 }
 0x1f4   : > { %v1401_v11 = vsel %vm1359_vm2, %v1377_v58, %v1389_v5  ;;  %2051 = vrcp.f32 %v1190_v3  ;;  %v1390_v12 = vrot.slane %v1829_v9, 5  ;;  %vm1220_vm7 = vcmp.gt.f32.partialorder %v1188_v4, 0.0 }
 0x1f5   : > { %1429 = vst [vmem:[%s2606_s1 + $0x20] sm:$0x3] %v1401_v11  ;;  %v1403_v13 = vsel %vm1359_vm2, %v1379_v6, %v1391_v8  ;;  %2053 = vrcp.f32 %v1192_v10  ;;  %v1831_v14 = vsel %vm1220_vm7, 1.0, %v2101_v46 }
 0x1f6   : > { %1431 = vst [vmem:[%s2606_s1 + $0x30] sm:$0x3] %v1403_v13  ;;  %v1402_v17 = vsel %vm1359_vm2, %v1378_v59, %v1390_v12  ;;  %v1392_v18 = vrot.slane %v1831_v14, 5 }
 0x1f7   : > { %1430 = vst [vmem:[%s2606_s1 + $0x28] sm:$0x3] %v1402_v17 }
 0x1f8   : > { %v1404_v19 = vsel %vm1359_vm2, %v1380_v61, %v1392_v18 }
 0x1f9   : > { %1432 = vst [vmem:[%s2606_s1 + $0x38] sm:$0x3] %v1404_v19 }
 0x1fc   : > { %v2048_v24 = vpop.eup %2047 }
 0x1fd   : > { %v2050_v30 = vpop.eup %2049  ;;  %v1200_v31 = vrot.slane %v2048_v24, %v2254_v60 }
 0x1fe   : > { %v2052_v29 = vpop.eup %2051  ;;  %v1208_v36 = vrot.slane %v2050_v30, %v2254_v60 }
 0x1ff   : > { %v2054_v46 = vpop.eup %2053  ;;  %v1213_v37 = vmul.f32 %v1200_v31, %v1185_v57  ;;  %v1204_v38 = vrot.slane %v2052_v29, %v2254_v60 }
 0x200   : > { %v1215_v39 = vmul.f32 %v1208_v36, %v1187_v63  ;;  %v1212_v40 = vrot.slane %v2054_v46, %v2254_v60 }
 0x201   : > { %v1397_v16 = vsel %vm1025_vm13, %v1213_v37, %v1377_v58  ;;  %v1214_v42 = vmul.f32 %v1204_v38, %v1186_v0 }
 0x202   : > { %1425 = vst [vmem:[%s2606_s1] sm:$0xff] %v1397_v16  ;;  %v1399_v32 = vsel %vm1025_vm13, %v1215_v39, %v1379_v6  ;;  %v1216_v20 = vmul.f32 %v1212_v40, %v1188_v4 }
 0x203   : > { %1427 = vst [vmem:[%s2606_s1 + $0x10] sm:$0xff] %v1399_v32  ;;  %v1398_v43 = vsel %vm1025_vm13, %v1214_v42, %v1378_v59 }
 0x204   : > { %1426 = vst [vmem:[%s2606_s1 + $0x8] sm:$0xff] %v1398_v43  ;;  %v1400_v21 = vsel %vm1025_vm13, %v1216_v20, %v1380_v61 }
 0x205   : > { %1428 = vst [vmem:[%s2606_s1 + $0x18] sm:$0xff] %v1400_v21 }
 0x206 PF: > { %s16_s19 = sadd.s32 1, %s2096_s19   ;;  %s2659_s17 = smov %s2092_s18 }
 0x207   : > { %p13_p2 = scmp.ge.s32.totalorder %s16_s19, 4   ;;  %s2660_s18 = smov %s2662_s20 }
 0x209   :  { %15 = sbr.rel (!%p13_p2) target bundleno = 4 (0x4), region = 82 }
 0x210   :  { %1463 = vsyncpa [#allocation5], 1 }
 0x211   :  { %1465 = vsyncpa [#allocation5 + $0x1], 1 }

</bundles_post_ra>
